<compile_context>
chip_gen: v7x
topology: tpu7x:2x2x1
jax: 0.10.0
libtpu: 0.0.40
codegen_flags: <defaults>
</compile_context>

<pallas_src>
import numpy as np

import jax
import jax.numpy as jnp
from jax import lax
from jax.experimental import pallas as pl
from jax.experimental.pallas import tpu as pltpu

# Module hyper-parameters (Interpenetration.__init__ defaults).
MAX_COLLISIONS = 128
DF_CONE_HEIGHT = 1e-4      # sigma
PENALIZE_OUTSIDE = True
POINT2PLANE = False
EPS = 1e-8


def _round_up(x, m):
    return ((x + m - 1) // m) * m


# --------------------------------------------------------------------------
# Kernel 1: tiled brute-force collision detection with in-kernel pair compaction.
# Grid: (B, n_upper_tile_pairs); tile_i / tile_j come from SMEM-prefetched tables so
# strictly-lower-triangle tiles are never visited.  Hits (AABB overlap, no shared
# vertex, i < j) are encoded as i * f_code + j, and up to `max_collisions` smallest
# codes per batch are extracted with a min/erase loop and written into the resident
# (1, 2, C) output block via one-hot vector selects.  Counter lives in SMEM scratch.
# --------------------------------------------------------------------------
def _make_collision_kernel(*, ti, tj, f_code, code_shift, max_collisions):
    SENT = np.int32(np.iinfo(np.int32).max)

    def kernel(ti_tbl, tj_tbl,                       # scalar-prefetch refs (SMEM)
               aabb_r_ref, aabb_c_ref, faces_r_ref, faces_c_ref,
               out_ref, cnt_ref, codes_ref):
        p = pl.program_id(1)

        # Per-batch init: reset the pair counter and fill the output with -1.
        @pl.when(p == 0)
        def _():
            cnt_ref[0] = 0
            out_ref[...] = jnp.full(out_ref.shape, -1, dtype=jnp.int32)

        row0 = ti_tbl[p] * ti
        col0 = tj_tbl[p] * tj

        aabb_r = aabb_r_ref[0]          # (TI, 8) f32: [min xyz | max xyz | 0 0]
        aabb_c = aabb_c_ref[0]          # (8, TJ) f32
        faces_r = faces_r_ref[...]      # (TI, 3) int32
        faces_c = faces_c_ref[...]      # (3, TJ) int32

        # AABB overlap on all three axes.
        overlap = None
        for k in range(3):
            mn_i = aabb_r[:, k:k + 1]               # (TI, 1)
            mx_i = aabb_r[:, 3 + k:4 + k]           # (TI, 1)
            mn_j = aabb_c[k:k + 1, :]               # (1, TJ)
            mx_j = aabb_c[3 + k:4 + k, :]           # (1, TJ)
            ok = (mn_i <= mx_j) & (mn_j <= mx_i)    # (TI, TJ)
            overlap = ok if overlap is None else (overlap & ok)

        # Exclude face pairs sharing a vertex (includes i == j).
        share = None
        for a in range(3):
            fa = faces_r[:, a:a + 1]                # (TI, 1)
            for bb in range(3):
                fb = faces_c[bb:bb + 1, :]          # (1, TJ)
                eq = fa == fb
                share = eq if share is None else (share | eq)

        # Upper triangle (i < j): needed on diagonal-band tiles; cheap everywhere.
        r_idx = lax.broadcasted_iota(jnp.int32, (ti, 1), 0) + row0   # (TI, 1)
        c_idx = lax.broadcasted_iota(jnp.int32, (1, tj), 1) + col0   # (1, TJ)
        hit = overlap & jnp.logical_not(share) & (r_idx < c_idx)     # (TI, TJ)
        nh = jnp.sum(hit.astype(jnp.int32))

        # Fast path: most tiles have no hits (or the batch is already saturated).
        @pl.when(jnp.logical_and(nh > 0, cnt_ref[0] < max_collisions))
        def _():
            codes = jnp.where(hit, r_idx * f_code + c_idx, SENT).astype(jnp.int32)
            codes_ref[...] = codes

            sub_io = lax.broadcasted_iota(jnp.int32, out_ref.shape, 1)   # 0 -> i, 1 -> j
            lane_io = lax.broadcasted_iota(jnp.int32, out_ref.shape, 2)  # pair slot

            def body(_, rem):
                can = jnp.logical_and(rem > 0, cnt_ref[0] < max_collisions)

                @pl.when(can)
                def _():
                    m = jnp.min(codes_ref[...])
                    i_idx = lax.shift_right_logical(m, jnp.int32(code_shift))
                    j_idx = jnp.bitwise_and(m, jnp.int32(f_code - 1))
                    c = cnt_ref[0]
                    pair_val = jnp.where(sub_io == 0, i_idx, j_idx)
                    out_ref[...] = jnp.where(lane_io == c, pair_val, out_ref[...])
                    cnt_ref[0] = c + 1
                    codes_ref[...] = jnp.where(codes_ref[...] == m, SENT,
                                               codes_ref[...])

                return rem - can.astype(jnp.int32)

            lax.fori_loop(0, max_collisions, body, nh)

    return kernel


# --------------------------------------------------------------------------
# Kernel 2: conical distance-field penetration penalty (DistanceFieldPenetrationLoss,
# vectorized, sigma=DF_CONE_HEIGHT, penalize_outside=True, point2plane=False).
# Lane-tiled 1-D grid; resident (1,1) f32 accumulator (init at step 0).
# TODO(synk): bit-exact parity with torch-mesh-isect's CUDA/vectorized loss is not
#             verified; this implements the published conic distance-field penalty.
# --------------------------------------------------------------------------
def _pen_loss_kernel(intr_ref, recv_ref, valid_ref, o_ref):
    @pl.when(pl.program_id(0) == 0)
    def _():
        o_ref[...] = jnp.zeros_like(o_ref)

    intr = intr_ref[...]       # (9, LT)  rows: v0x v0y v0z v1x v1y v1z v2x v2y v2z
    recv = recv_ref[...]       # (9, LT)
    valid = valid_ref[...]     # (1, LT)

    def verts(t):
        return [(t[3 * i:3 * i + 1, :],
                 t[3 * i + 1:3 * i + 2, :],
                 t[3 * i + 2:3 * i + 3, :]) for i in range(3)]

    def sub(a, c):
        return tuple(a[k] - c[k] for k in range(3))

    def dot3(a, c):
        return a[0] * c[0] + a[1] * c[1] + a[2] * c[2]

    def cross(a, c):
        return (a[1] * c[2] - a[2] * c[1],
                a[2] * c[0] - a[0] * c[2],
                a[0] * c[1] - a[1] * c[0])

    def cone_pen(points_tri, cone_tri):
        """Penetration of points_tri's vertices into cone_tri's conic field."""
        vs = verts(cone_tri)
        c = tuple((vs[0][k] + vs[1][k] + vs[2][k]) * (1.0 / 3.0) for k in range(3))
        e0 = sub(vs[1], vs[0])
        e1 = sub(vs[2], vs[0])
        n = cross(e0, e1)
        inv_n_len = lax.rsqrt(dot3(n, n) + EPS)            # EUP, not VALU divide
        n = tuple(nk * inv_n_len for nk in n)
        # cone base radius via max squared centroid distance (no sqrt, no reciprocal)
        d0 = sub(vs[0], c)
        d1 = sub(vs[1], c)
        d2 = sub(vs[2], c)
        r2 = jnp.maximum(jnp.maximum(dot3(d0, d0), dot3(d1, d1)), dot3(d2, d2))
        inv_r = lax.rsqrt(r2 + EPS)                        # EUP
        total = None
        for pv in verts(points_tri):
            d = sub(pv, c)
            h = dot3(d, n)                                     # signed height
            lat = tuple(d[k] - h * n[k] for k in range(3))     # in-plane offset
            rho = jnp.sqrt(dot3(lat, lat) + EPS)
            if PENALIZE_OUTSIDE:
                depth = jnp.maximum(DF_CONE_HEIGHT - h, 0.0)
            else:
                depth = jnp.maximum(-h, 0.0)
            if POINT2PLANE:
                psi = depth
            else:
                psi = depth * jnp.maximum(1.0 - rho * inv_r, 0.0)
            p2 = psi * psi
            total = p2 if total is None else total + p2
        return total                                           # (1, LT)

    pen = cone_pen(intr, recv) + cone_pen(recv, intr)          # (1, LT)
    o_ref[...] = o_ref[...] + jnp.sum(pen * valid)


# --------------------------------------------------------------------------
# Wrapper (glue): gather triangles, run the two Pallas kernels, gather collision
# pairs, and apply the "no collisions -> 0.0" branch.
# --------------------------------------------------------------------------
def interpenetration_loss(vertices, faces, max_collisions=MAX_COLLISIONS):
    B, V, _ = vertices.shape
    F = faces.shape[0]
    C = max_collisions

    # triangles = index_select(vertices, 1, faces.view(-1)).view(B, F, 3, 3)
    triangles = jnp.take(vertices, faces.reshape(-1), axis=1).reshape(B, F, 3, 3)
    tri_flat = triangles.reshape(B, F, 9)

    # Broad-phase AABBs (trivial O(F) glue; the O(F^2) test runs in the kernel).
    mins = triangles.min(axis=2)                 # (B, F, 3)
    maxs = triangles.max(axis=2)                 # (B, F, 3)
    faces_i32 = faces.astype(jnp.int32)          # (F, 3)

    # ---- tiling: TI=256 x TJ=1024 for big meshes, one square tile for small ones.
    TI_TGT, TJ_TGT = 256, 1024
    F_pad = _round_up(F, 128)
    if F_pad > TJ_TGT:
        F_pad = _round_up(F, TJ_TGT)
        TI, TJ = TI_TGT, TJ_TGT
    else:
        TI = TJ = F_pad
    assert F_pad <= 32768, "mesh too large for int32 (i, j) pair encoding"
    f_code = 1 << (F_pad - 1).bit_length()       # next pow2 >= F_pad
    code_shift = f_code.bit_length() - 1

    pad = F_pad - F
    mins_p = jnp.pad(mins, ((0, 0), (0, pad), (0, 0)), constant_values=float("inf"))
    maxs_p = jnp.pad(maxs, ((0, 0), (0, pad), (0, 0)), constant_values=-float("inf"))
    # Fused AABBs: one (B, F_pad, 8) row-side ref and one (B, 8, F_pad) column-side ref.
    aabb_r = jnp.concatenate(
        [mins_p, maxs_p, jnp.zeros((B, F_pad, 2), jnp.float32)], axis=-1)
    aabb_c = jnp.swapaxes(aabb_r, 1, 2)
    faces_p = jnp.pad(faces_i32, ((0, pad), (0, 0)), constant_values=-1)   # (F_pad, 3)
    faces_ct = faces_p.T                                                    # (3, F_pad)

    # Upper-triangle tile-pair tables (strictly-lower tiles never visited).
    n_ti = F_pad // TI
    n_tj = F_pad // TJ
    pair_list = [(i, j) for i in range(n_ti) for j in range(n_tj)
                 if i * TI < (j + 1) * TJ]
    n_pairs = len(pair_list)
    ti_tbl = jnp.asarray([p[0] for p in pair_list], dtype=jnp.int32)
    tj_tbl = jnp.asarray([p[1] for p in pair_list], dtype=jnp.int32)

    kernel = _make_collision_kernel(ti=TI, tj=TJ, f_code=f_code,
                                    code_shift=code_shift, max_collisions=C)
    pairs_out = pl.pallas_call(
        kernel,
        out_shape=jax.ShapeDtypeStruct((B, 2, C), jnp.int32),
        grid_spec=pltpu.PrefetchScalarGridSpec(
            num_scalar_prefetch=2,
            grid=(B, n_pairs),
            in_specs=[
                pl.BlockSpec((1, TI, 8), lambda b, p, ti_t, tj_t: (b, ti_t[p], 0)),
                pl.BlockSpec((1, 8, TJ), lambda b, p, ti_t, tj_t: (b, 0, tj_t[p])),
                pl.BlockSpec((TI, 3), lambda b, p, ti_t, tj_t: (ti_t[p], 0)),
                pl.BlockSpec((3, TJ), lambda b, p, ti_t, tj_t: (0, tj_t[p])),
            ],
            out_specs=pl.BlockSpec((1, 2, C), lambda b, p, ti_t, tj_t: (b, 0, 0)),
            scratch_shapes=[
                pltpu.SMEM((1,), jnp.int32),            # per-batch pair counter
                pltpu.VMEM((TI, TJ), jnp.int32),        # hit-code scratch
            ],
        ),
        compiler_params=pltpu.CompilerParams(
            dimension_semantics=("arbitrary", "arbitrary")),
    )(ti_tbl, tj_tbl, aabb_r, aabb_c, faces_p, faces_ct)

    collision_idxs = jnp.swapaxes(pairs_out, 1, 2)       # (B, C, 2), -1 padded

    # Gather the colliding triangle pairs (data-dependent gather -> glue).
    safe = jnp.where(collision_idxs >= 0, collision_idxs, 0)
    bidx = jnp.arange(B)[:, None]
    intr_tri = tri_flat[bidx, safe[:, :, 0]]              # (B, C, 9)
    recv_tri = tri_flat[bidx, safe[:, :, 1]]              # (B, C, 9)

    # Fuse batch into the lane axis, coordinate-major (9, B*C); pad and lane-tile.
    BC = B * C
    LT_TGT = 1024
    BC_pad = _round_up(BC, 128)
    if BC_pad > LT_TGT:
        BC_pad = _round_up(BC, LT_TGT)
        LT = LT_TGT
    else:
        LT = BC_pad
    lane_pad = BC_pad - BC

    intr_t = jnp.swapaxes(intr_tri.reshape(BC, 9), 0, 1)      # (9, B*C)
    recv_t = jnp.swapaxes(recv_tri.reshape(BC, 9), 0, 1)      # (9, B*C)
    valid = (collision_idxs[:, :, 0] >= 0).astype(jnp.float32).reshape(1, BC)
    if lane_pad:
        intr_t = jnp.pad(intr_t, ((0, 0), (0, lane_pad)))
        recv_t = jnp.pad(recv_t, ((0, 0), (0, lane_pad)))
        valid = jnp.pad(valid, ((0, 0), (0, lane_pad)))

    loss = pl.pallas_call(
        _pen_loss_kernel,
        out_shape=jax.ShapeDtypeStruct((1, 1), jnp.float32),
        grid=(BC_pad // LT,),
        in_specs=[
            pl.BlockSpec((9, LT), lambda t: (0, t)),
            pl.BlockSpec((9, LT), lambda t: (0, t)),
            pl.BlockSpec((1, LT), lambda t: (0, t)),
        ],
        out_specs=pl.BlockSpec((1, 1), lambda t: (0, 0)),
        compiler_params=pltpu.CompilerParams(dimension_semantics=("arbitrary",)),
    )(intr_t, recv_t, valid)[0, 0]

    # `if collision_idxs.ge(0).sum().item() > 0 else 0.0`
    any_valid = jnp.any(collision_idxs >= 0)
    return jnp.where(any_valid, loss, jnp.float32(0.0))


if __name__ == "__main__":
    key = jax.random.PRNGKey(0)
    kv, kf = jax.random.split(key)

    B, V, F = 2, 32, 64
    vertices = jax.random.normal(kv, (B, V, 3), dtype=jnp.float32)
    faces = jax.random.randint(kf, (F, 3), 0, V, dtype=jnp.int32)

    loss = interpenetration_loss(vertices, faces, max_collisions=MAX_COLLISIONS)
    jax.block_until_ready(loss)
    print("KERNEL_OK")
</pallas_src>

<mosaic_0001>
module attributes {stable_mosaic.version = 11 : i64} {
  func.func @kernel(%arg0: i32, %arg1: i32, %arg2: memref<1xi32, #tpu.memory_space<smem>>, %arg3: memref<1xi32, #tpu.memory_space<smem>>, %arg4: memref<1x128x8xf32, #tpu.memory_space<vmem>>, %arg5: memref<1x8x128xf32, #tpu.memory_space<vmem>>, %arg6: memref<128x3xi32, #tpu.memory_space<vmem>>, %arg7: memref<3x128xi32, #tpu.memory_space<vmem>>, %arg8: memref<1x2x128xi32, #tpu.memory_space<vmem>>, %arg9: memref<1xi32, #tpu.memory_space<smem>>, %arg10: memref<128x128xi32, #tpu.memory_space<vmem>>) attributes {dimension_semantics = [#tpu.dimension_semantics<arbitrary>, #tpu.dimension_semantics<arbitrary>], iteration_bounds = array<i64: 2, 1>, scalar_prefetch = 2 : i64, scratch_operands = 2 : i64, tpu.core_type = #tpu.core_type<tc>, window_params = [{transform_indices = @transform_0, window_bounds = array<i64: 1, 128, 8>}, {transform_indices = @transform_1, window_bounds = array<i64: 1, 8, 128>}, {transform_indices = @transform_2, window_bounds = array<i64: 128, 3>}, {transform_indices = @transform_3, window_bounds = array<i64: 3, 128>}, {transform_indices = @transform_4, window_bounds = array<i64: 1, 2, 128>}]} {
    %c0_i32 = arith.constant 0 : i32
    %0 = arith.cmpi eq, %arg1, %c0_i32 : i32
    %1 = arith.extui %0 : i1 to i32
    %c0_i32_0 = arith.constant 0 : i32
    %2 = arith.cmpi ne, %1, %c0_i32_0 : i32
    scf.if %2 {
      %c0_i32_16 = arith.constant 0 : i32
      %c0_17 = arith.constant 0 : index
      %120 = memref.load %arg9[%c0_17] : memref<1xi32, #tpu.memory_space<smem>>
      memref.store %c0_i32_16, %arg9[%c0_17] : memref<1xi32, #tpu.memory_space<smem>>
      %c-1_i32 = arith.constant -1 : i32
      %121 = vector.broadcast %c-1_i32 : i32 to vector<1x2x128xi32>
      %c0_18 = arith.constant 0 : index
      %c0_19 = arith.constant 0 : index
      %c0_20 = arith.constant 0 : index
      %122 = vector.load %arg8[%c0_18, %c0_19, %c0_20] : memref<1x2x128xi32, #tpu.memory_space<vmem>>, vector<1x2x128xi32>
      tpu.vector_store %arg8[%c0_18, %c0_19, %c0_20], %121 {strides = array<i32>} : memref<1x2x128xi32, #tpu.memory_space<vmem>>, vector<1x2x128xi32>,
    } else {
    }
    %3 = arith.index_cast %arg1 : i32 to index
    %4 = memref.load %arg2[%3] : memref<1xi32, #tpu.memory_space<smem>>
    %c128_i32 = arith.constant 128 : i32
    %5 = arith.muli %4, %c128_i32 : i32
    %6 = arith.index_cast %arg1 : i32 to index
    %7 = memref.load %arg3[%6] : memref<1xi32, #tpu.memory_space<smem>>
    %c128_i32_1 = arith.constant 128 : i32
    %8 = arith.muli %7, %c128_i32_1 : i32
    %c0 = arith.constant 0 : index
    %c0_2 = arith.constant 0 : index
    %c0_3 = arith.constant 0 : index
    %9 = vector.load %arg4[%c0, %c0_2, %c0_3] : memref<1x128x8xf32, #tpu.memory_space<vmem>>, vector<1x128x8xf32>
    %10 = vector.shape_cast %9 : vector<1x128x8xf32> to vector<128x8xf32>
    %c0_4 = arith.constant 0 : index
    %c0_5 = arith.constant 0 : index
    %c0_6 = arith.constant 0 : index
    %11 = vector.load %arg5[%c0_4, %c0_5, %c0_6] : memref<1x8x128xf32, #tpu.memory_space<vmem>>, vector<1x8x128xf32>
    %12 = vector.shape_cast %11 : vector<1x8x128xf32> to vector<8x128xf32>
    %c0_7 = arith.constant 0 : index
    %c0_8 = arith.constant 0 : index
    %13 = vector.load %arg6[%c0_7, %c0_8] : memref<128x3xi32, #tpu.memory_space<vmem>>, vector<128x3xi32>
    %c0_9 = arith.constant 0 : index
    %c0_10 = arith.constant 0 : index
    %14 = vector.load %arg7[%c0_9, %c0_10] : memref<3x128xi32, #tpu.memory_space<vmem>>, vector<3x128xi32>
    %15 = vector.extract_strided_slice %10 {offsets = [0, 0], sizes = [128, 1], strides = [1, 1]} : vector<128x8xf32> to vector<128x1xf32>
    %16 = vector.extract_strided_slice %10 {offsets = [0, 3], sizes = [128, 1], strides = [1, 1]} : vector<128x8xf32> to vector<128x1xf32>
    %17 = vector.extract_strided_slice %12 {offsets = [0, 0], sizes = [1, 128], strides = [1, 1]} : vector<8x128xf32> to vector<1x128xf32>
    %18 = vector.extract_strided_slice %12 {offsets = [3, 0], sizes = [1, 128], strides = [1, 1]} : vector<8x128xf32> to vector<1x128xf32>
    %19 = vector.broadcast %15 : vector<128x1xf32> to vector<128x128xf32>
    %20 = vector.broadcast %18 : vector<1x128xf32> to vector<128x128xf32>
    %21 = arith.cmpf ole, %19, %20 : vector<128x128xf32>
    %22 = vector.broadcast %17 : vector<1x128xf32> to vector<128x128xf32>
    %23 = vector.broadcast %16 : vector<128x1xf32> to vector<128x128xf32>
    %24 = arith.cmpf ole, %22, %23 : vector<128x128xf32>
    %25 = arith.andi %21, %24 : vector<128x128xi1>
    %26 = vector.extract_strided_slice %10 {offsets = [0, 1], sizes = [128, 1], strides = [1, 1]} : vector<128x8xf32> to vector<128x1xf32>
    %27 = vector.extract_strided_slice %10 {offsets = [0, 4], sizes = [128, 1], strides = [1, 1]} : vector<128x8xf32> to vector<128x1xf32>
    %28 = vector.extract_strided_slice %12 {offsets = [1, 0], sizes = [1, 128], strides = [1, 1]} : vector<8x128xf32> to vector<1x128xf32>
    %29 = vector.extract_strided_slice %12 {offsets = [4, 0], sizes = [1, 128], strides = [1, 1]} : vector<8x128xf32> to vector<1x128xf32>
    %30 = vector.broadcast %26 : vector<128x1xf32> to vector<128x128xf32>
    %31 = vector.broadcast %29 : vector<1x128xf32> to vector<128x128xf32>
    %32 = arith.cmpf ole, %30, %31 : vector<128x128xf32>
    %33 = vector.broadcast %28 : vector<1x128xf32> to vector<128x128xf32>
    %34 = vector.broadcast %27 : vector<128x1xf32> to vector<128x128xf32>
    %35 = arith.cmpf ole, %33, %34 : vector<128x128xf32>
    %36 = arith.andi %32, %35 : vector<128x128xi1>
    %37 = arith.andi %25, %36 : vector<128x128xi1>
    %38 = vector.extract_strided_slice %10 {offsets = [0, 2], sizes = [128, 1], strides = [1, 1]} : vector<128x8xf32> to vector<128x1xf32>
    %39 = vector.extract_strided_slice %10 {offsets = [0, 5], sizes = [128, 1], strides = [1, 1]} : vector<128x8xf32> to vector<128x1xf32>
    %40 = vector.extract_strided_slice %12 {offsets = [2, 0], sizes = [1, 128], strides = [1, 1]} : vector<8x128xf32> to vector<1x128xf32>
    %41 = vector.extract_strided_slice %12 {offsets = [5, 0], sizes = [1, 128], strides = [1, 1]} : vector<8x128xf32> to vector<1x128xf32>
    %42 = vector.broadcast %38 : vector<128x1xf32> to vector<128x128xf32>
    %43 = vector.broadcast %41 : vector<1x128xf32> to vector<128x128xf32>
    %44 = arith.cmpf ole, %42, %43 : vector<128x128xf32>
    %45 = vector.broadcast %40 : vector<1x128xf32> to vector<128x128xf32>
    %46 = vector.broadcast %39 : vector<128x1xf32> to vector<128x128xf32>
    %47 = arith.cmpf ole, %45, %46 : vector<128x128xf32>
    %48 = arith.andi %44, %47 : vector<128x128xi1>
    %49 = arith.andi %37, %48 : vector<128x128xi1>
    %50 = vector.extract_strided_slice %13 {offsets = [0, 0], sizes = [128, 1], strides = [1, 1]} : vector<128x3xi32> to vector<128x1xi32>
    %51 = vector.extract_strided_slice %14 {offsets = [0, 0], sizes = [1, 128], strides = [1, 1]} : vector<3x128xi32> to vector<1x128xi32>
    %52 = vector.broadcast %50 : vector<128x1xi32> to vector<128x128xi32>
    %53 = vector.broadcast %51 : vector<1x128xi32> to vector<128x128xi32>
    %54 = arith.cmpi eq, %52, %53 : vector<128x128xi32>
    %55 = vector.extract_strided_slice %14 {offsets = [1, 0], sizes = [1, 128], strides = [1, 1]} : vector<3x128xi32> to vector<1x128xi32>
    %56 = vector.broadcast %50 : vector<128x1xi32> to vector<128x128xi32>
    %57 = vector.broadcast %55 : vector<1x128xi32> to vector<128x128xi32>
    %58 = arith.cmpi eq, %56, %57 : vector<128x128xi32>
    %59 = arith.ori %54, %58 : vector<128x128xi1>
    %60 = vector.extract_strided_slice %14 {offsets = [2, 0], sizes = [1, 128], strides = [1, 1]} : vector<3x128xi32> to vector<1x128xi32>
    %61 = vector.broadcast %50 : vector<128x1xi32> to vector<128x128xi32>
    %62 = vector.broadcast %60 : vector<1x128xi32> to vector<128x128xi32>
    %63 = arith.cmpi eq, %61, %62 : vector<128x128xi32>
    %64 = arith.ori %59, %63 : vector<128x128xi1>
    %65 = vector.extract_strided_slice %13 {offsets = [0, 1], sizes = [128, 1], strides = [1, 1]} : vector<128x3xi32> to vector<128x1xi32>
    %66 = vector.extract_strided_slice %14 {offsets = [0, 0], sizes = [1, 128], strides = [1, 1]} : vector<3x128xi32> to vector<1x128xi32>
    %67 = vector.broadcast %65 : vector<128x1xi32> to vector<128x128xi32>
    %68 = vector.broadcast %66 : vector<1x128xi32> to vector<128x128xi32>
    %69 = arith.cmpi eq, %67, %68 : vector<128x128xi32>
    %70 = arith.ori %64, %69 : vector<128x128xi1>
    %71 = vector.extract_strided_slice %14 {offsets = [1, 0], sizes = [1, 128], strides = [1, 1]} : vector<3x128xi32> to vector<1x128xi32>
    %72 = vector.broadcast %65 : vector<128x1xi32> to vector<128x128xi32>
    %73 = vector.broadcast %71 : vector<1x128xi32> to vector<128x128xi32>
    %74 = arith.cmpi eq, %72, %73 : vector<128x128xi32>
    %75 = arith.ori %70, %74 : vector<128x128xi1>
    %76 = vector.extract_strided_slice %14 {offsets = [2, 0], sizes = [1, 128], strides = [1, 1]} : vector<3x128xi32> to vector<1x128xi32>
    %77 = vector.broadcast %65 : vector<128x1xi32> to vector<128x128xi32>
    %78 = vector.broadcast %76 : vector<1x128xi32> to vector<128x128xi32>
    %79 = arith.cmpi eq, %77, %78 : vector<128x128xi32>
    %80 = arith.ori %75, %79 : vector<128x128xi1>
    %81 = vector.extract_strided_slice %13 {offsets = [0, 2], sizes = [128, 1], strides = [1, 1]} : vector<128x3xi32> to vector<128x1xi32>
    %82 = vector.extract_strided_slice %14 {offsets = [0, 0], sizes = [1, 128], strides = [1, 1]} : vector<3x128xi32> to vector<1x128xi32>
    %83 = vector.broadcast %81 : vector<128x1xi32> to vector<128x128xi32>
    %84 = vector.broadcast %82 : vector<1x128xi32> to vector<128x128xi32>
    %85 = arith.cmpi eq, %83, %84 : vector<128x128xi32>
    %86 = arith.ori %80, %85 : vector<128x128xi1>
    %87 = vector.extract_strided_slice %14 {offsets = [1, 0], sizes = [1, 128], strides = [1, 1]} : vector<3x128xi32> to vector<1x128xi32>
    %88 = vector.broadcast %81 : vector<128x1xi32> to vector<128x128xi32>
    %89 = vector.broadcast %87 : vector<1x128xi32> to vector<128x128xi32>
    %90 = arith.cmpi eq, %88, %89 : vector<128x128xi32>
    %91 = arith.ori %86, %90 : vector<128x128xi1>
    %92 = vector.extract_strided_slice %14 {offsets = [2, 0], sizes = [1, 128], strides = [1, 1]} : vector<3x128xi32> to vector<1x128xi32>
    %93 = vector.broadcast %81 : vector<128x1xi32> to vector<128x128xi32>
    %94 = vector.broadcast %92 : vector<1x128xi32> to vector<128x128xi32>
    %95 = arith.cmpi eq, %93, %94 : vector<128x128xi32>
    %96 = arith.ori %91, %95 : vector<128x128xi1>
    %97 = tpu.iota {dimensions = array<i32: 0>} : vector<128x1xi32>
    %98 = vector.broadcast %5 : i32 to vector<128x1xi32>
    %99 = arith.addi %97, %98 : vector<128x1xi32>
    %100 = tpu.iota {dimensions = array<i32: 1>} : vector<1x128xi32>
    %101 = vector.broadcast %8 : i32 to vector<1x128xi32>
    %102 = arith.addi %100, %101 : vector<1x128xi32>
    %cst = arith.constant dense<true> : vector<128x128xi1>
    %103 = arith.xori %96, %cst : vector<128x128xi1>
    %104 = arith.andi %49, %103 : vector<128x128xi1>
    %105 = vector.broadcast %99 : vector<128x1xi32> to vector<128x128xi32>
    %106 = vector.broadcast %102 : vector<1x128xi32> to vector<128x128xi32>
    %107 = arith.cmpi slt, %105, %106 : vector<128x128xi32>
    %108 = arith.andi %104, %107 : vector<128x128xi1>
    %109 = arith.extui %108 : vector<128x128xi1> to vector<128x128xi32>
    %110 = vector.shape_cast %109 : vector<128x128xi32> to vector<1x128x128xi32>
    %cst_11 = arith.constant dense<0> : vector<1xi32>
    %111 = vector.multi_reduction <add>, %110, %cst_11 [1, 2] : vector<1x128x128xi32> to vector<1xi32>
    %112 = vector.shape_cast %111 : vector<1xi32> to vector<1x1x1xi32>
    %113 = vector.extract %112[0, 0, 0] : i32 from vector<1x1x1xi32>
    %c0_i32_12 = arith.constant 0 : i32
    %114 = arith.cmpi sgt, %113, %c0_i32_12 : i32
    %c0_13 = arith.constant 0 : index
    %115 = memref.load %arg9[%c0_13] : memref<1xi32, #tpu.memory_space<smem>>
    %c128_i32_14 = arith.constant 128 : i32
    %116 = arith.cmpi slt, %115, %c128_i32_14 : i32
    %117 = arith.andi %114, %116 : i1
    %118 = arith.extui %117 : i1 to i32
    %c0_i32_15 = arith.constant 0 : i32
    %119 = arith.cmpi ne, %118, %c0_i32_15 : i32
    scf.if %119 {
      %c128_i32_16 = arith.constant 128 : i32
      %120 = vector.broadcast %c128_i32_16 : i32 to vector<128x1xi32>
      %121 = arith.muli %99, %120 : vector<128x1xi32>
      %122 = vector.broadcast %121 : vector<128x1xi32> to vector<128x128xi32>
      %123 = vector.broadcast %102 : vector<1x128xi32> to vector<128x128xi32>
      %124 = arith.addi %122, %123 : vector<128x128xi32>
      %c2147483647_i32 = arith.constant 2147483647 : i32
      %125 = vector.broadcast %c2147483647_i32 : i32 to vector<128x128xi32>
      %126 = arith.select %108, %124, %125 : vector<128x128xi1>, vector<128x128xi32>
      %c0_17 = arith.constant 0 : index
      %c0_18 = arith.constant 0 : index
      %127 = vector.load %arg10[%c0_17, %c0_18] : memref<128x128xi32, #tpu.memory_space<vmem>>, vector<128x128xi32>
      tpu.vector_store %arg10[%c0_17, %c0_18], %126 {strides = array<i32>} : memref<128x128xi32, #tpu.memory_space<vmem>>, vector<128x128xi32>,
      %128 = tpu.iota {dimensions = array<i32: 1>} : vector<1x2x128xi32>
      %129 = tpu.iota {dimensions = array<i32: 2>} : vector<1x2x128xi32>
      %c0_i32_19 = arith.constant 0 : i32
      %c128_i32_20 = arith.constant 128 : i32
      %130 = arith.addi %c0_i32_19, %c128_i32_20 : i32
      %c1_i32 = arith.constant 1 : i32
      %131 = scf.for %arg11 = %c0_i32_19 to %130 step %c1_i32 iter_args(%arg12 = %113) -> (i32)  : i32 {
        %c0_i32_21 = arith.constant 0 : i32
        %132 = arith.cmpi sgt, %arg12, %c0_i32_21 : i32
        %c0_22 = arith.constant 0 : index
        %133 = memref.load %arg9[%c0_22] : memref<1xi32, #tpu.memory_space<smem>>
        %c128_i32_23 = arith.constant 128 : i32
        %134 = arith.cmpi slt, %133, %c128_i32_23 : i32
        %135 = arith.andi %132, %134 : i1
        %136 = arith.extui %135 : i1 to i32
        %c0_i32_24 = arith.constant 0 : i32
        %137 = arith.cmpi ne, %136, %c0_i32_24 : i32
        scf.if %137 {
          %c0_25 = arith.constant 0 : index
          %c0_26 = arith.constant 0 : index
          %140 = vector.load %arg10[%c0_25, %c0_26] : memref<128x128xi32, #tpu.memory_space<vmem>>, vector<128x128xi32>
          %141 = vector.shape_cast %140 : vector<128x128xi32> to vector<1x128x128xi32>
          %cst_27 = arith.constant dense<2147483647> : vector<1xi32>
          %142 = vector.multi_reduction <minsi>, %141, %cst_27 [1, 2] : vector<1x128x128xi32> to vector<1xi32>
          %143 = vector.shape_cast %142 : vector<1xi32> to vector<1x1x1xi32>
          %144 = vector.extract %143[0, 0, 0] : i32 from vector<1x1x1xi32>
          %c7_i32 = arith.constant 7 : i32
          %145 = arith.shrui %144, %c7_i32 : i32
          %c127_i32 = arith.constant 127 : i32
          %146 = arith.andi %144, %c127_i32 : i32
          %c0_28 = arith.constant 0 : index
          %147 = memref.load %arg9[%c0_28] : memref<1xi32, #tpu.memory_space<smem>>
          %c0_i32_29 = arith.constant 0 : i32
          %148 = vector.broadcast %c0_i32_29 : i32 to vector<1x2x128xi32>
          %149 = arith.cmpi eq, %128, %148 : vector<1x2x128xi32>
          %150 = vector.broadcast %145 : i32 to vector<1x2x128xi32>
          %151 = vector.broadcast %146 : i32 to vector<1x2x128xi32>
          %152 = arith.select %149, %150, %151 : vector<1x2x128xi1>, vector<1x2x128xi32>
          %153 = vector.broadcast %147 : i32 to vector<1x2x128xi32>
          %154 = arith.cmpi eq, %129, %153 : vector<1x2x128xi32>
          %c0_30 = arith.constant 0 : index
          %c0_31 = arith.constant 0 : index
          %c0_32 = arith.constant 0 : index
          %155 = vector.load %arg8[%c0_30, %c0_31, %c0_32] : memref<1x2x128xi32, #tpu.memory_space<vmem>>, vector<1x2x128xi32>
          %156 = arith.select %154, %152, %155 : vector<1x2x128xi1>, vector<1x2x128xi32>
          %c0_33 = arith.constant 0 : index
          %c0_34 = arith.constant 0 : index
          %c0_35 = arith.constant 0 : index
          %157 = vector.load %arg8[%c0_33, %c0_34, %c0_35] : memref<1x2x128xi32, #tpu.memory_space<vmem>>, vector<1x2x128xi32>
          tpu.vector_store %arg8[%c0_33, %c0_34, %c0_35], %156 {strides = array<i32>} : memref<1x2x128xi32, #tpu.memory_space<vmem>>, vector<1x2x128xi32>,
          %c1_i32_36 = arith.constant 1 : i32
          %158 = arith.addi %147, %c1_i32_36 : i32
          %c0_37 = arith.constant 0 : index
          %159 = memref.load %arg9[%c0_37] : memref<1xi32, #tpu.memory_space<smem>>
          memref.store %158, %arg9[%c0_37] : memref<1xi32, #tpu.memory_space<smem>>
          %c0_38 = arith.constant 0 : index
          %c0_39 = arith.constant 0 : index
          %160 = vector.load %arg10[%c0_38, %c0_39] : memref<128x128xi32, #tpu.memory_space<vmem>>, vector<128x128xi32>
          %161 = vector.broadcast %144 : i32 to vector<128x128xi32>
          %162 = arith.cmpi eq, %160, %161 : vector<128x128xi32>
          %c0_40 = arith.constant 0 : index
          %c0_41 = arith.constant 0 : index
          %163 = vector.load %arg10[%c0_40, %c0_41] : memref<128x128xi32, #tpu.memory_space<vmem>>, vector<128x128xi32>
          %c2147483647_i32_42 = arith.constant 2147483647 : i32
          %164 = vector.broadcast %c2147483647_i32_42 : i32 to vector<128x128xi32>
          %165 = arith.select %162, %164, %163 : vector<128x128xi1>, vector<128x128xi32>
          %c0_43 = arith.constant 0 : index
          %c0_44 = arith.constant 0 : index
          %166 = vector.load %arg10[%c0_43, %c0_44] : memref<128x128xi32, #tpu.memory_space<vmem>>, vector<128x128xi32>
          tpu.vector_store %arg10[%c0_43, %c0_44], %165 {strides = array<i32>} : memref<128x128xi32, #tpu.memory_space<vmem>>, vector<128x128xi32>,
        } else {
        }
        %138 = arith.extui %135 : i1 to i32
        %139 = arith.subi %arg12, %138 : i32
        scf.yield %139 : i32
      }
    } else {
    }
    return
  }
  func.func @transform_0(%arg0: i32, %arg1: i32, %arg2: memref<1xi32, #tpu.memory_space<smem>>, %arg3: memref<1xi32, #tpu.memory_space<smem>>) -> (i32, i32, i32) {
    %0 = arith.index_cast %arg1 : i32 to index
    %1 = memref.load %arg2[%0] : memref<1xi32, #tpu.memory_space<smem>>
    %c0_i32 = arith.constant 0 : i32
    %c0_i32_0 = arith.constant 0 : i32
    return %arg0, %1, %c0_i32 : i32, i32, i32
  }
  func.func @transform_1(%arg0: i32, %arg1: i32, %arg2: memref<1xi32, #tpu.memory_space<smem>>, %arg3: memref<1xi32, #tpu.memory_space<smem>>) -> (i32, i32, i32) {
    %0 = arith.index_cast %arg1 : i32 to index
    %1 = memref.load %arg3[%0] : memref<1xi32, #tpu.memory_space<smem>>
    %c0_i32 = arith.constant 0 : i32
    %c0_i32_0 = arith.constant 0 : i32
    return %arg0, %c0_i32, %1 : i32, i32, i32
  }
  func.func @transform_2(%arg0: i32, %arg1: i32, %arg2: memref<1xi32, #tpu.memory_space<smem>>, %arg3: memref<1xi32, #tpu.memory_space<smem>>) -> (i32, i32) {
    %0 = arith.index_cast %arg1 : i32 to index
    %1 = memref.load %arg2[%0] : memref<1xi32, #tpu.memory_space<smem>>
    %c0_i32 = arith.constant 0 : i32
    %c0_i32_0 = arith.constant 0 : i32
    return %1, %c0_i32 : i32, i32
  }
  func.func @transform_3(%arg0: i32, %arg1: i32, %arg2: memref<1xi32, #tpu.memory_space<smem>>, %arg3: memref<1xi32, #tpu.memory_space<smem>>) -> (i32, i32) {
    %0 = arith.index_cast %arg1 : i32 to index
    %1 = memref.load %arg3[%0] : memref<1xi32, #tpu.memory_space<smem>>
    %c0_i32 = arith.constant 0 : i32
    %c0_i32_0 = arith.constant 0 : i32
    return %c0_i32, %1 : i32, i32
  }
  func.func @transform_4(%arg0: i32, %arg1: i32, %arg2: memref<1xi32, #tpu.memory_space<smem>>, %arg3: memref<1xi32, #tpu.memory_space<smem>>) -> (i32, i32, i32) {
    %c0_i32 = arith.constant 0 : i32
    %c0_i32_0 = arith.constant 0 : i32
    %c0_i32_1 = arith.constant 0 : i32
    return %arg0, %c0_i32, %c0_i32_0 : i32, i32, i32
  }
}

</mosaic_0001>

<bundles_post_ra>
// kernel: tpu_custom_call.1
= control target key start
LH: loop header
LB: loop body
LE: loop exit
PB: predicated region body
PF: predicated region fallthrough
CT: control target
= control target key end

     0   :  { %s4236_s0 = inlined_call_operand.<no memory space> [shape: s32[1], index: 0, kind: input, shape index: {}]   ;;  %s4237_s1 = inlined_call_operand.<no memory space> [shape: s32[1], index: 1, kind: input, shape index: {}]   ;;  %s4238_s2 = inlined_call_operand.vmem [shape: f32[2,128,8], index: 2, kind: input, shape index: {}]   ;;  %s4239_s3 = inlined_call_operand.vmem [shape: f32[2,8,128], index: 3, kind: input, shape index: {}]   ;;  %s4240_s4 = inlined_call_operand.vmem [shape: s32[128,3], index: 4, kind: input, shape index: {}]   ;;  %s4241_s5 = inlined_call_operand.vmem [shape: s32[3,128], index: 5, kind: input, shape index: {}]   ;;  %s4242_s6 = inlined_call_operand.hbm [shape: s32[2,2,128], index: 6, kind: output, shape index: {}]  }
   0x1   :  { %11 = sst [smem:[#allocation5]] %s4236_s0 }
   0x2   :  { %12 = sst [smem:[#allocation6]] %s4237_s1 }
   0x3   :  { %13 = vsyncpa [#allocation8], 0 }
   0x4   :  { %15 = vsyncpa [#allocation8 + $0x1], 0  ;;  %s2201_s25 = smov 0   ;;  %s2203_s26 = smov 0  }
   0x5   :  { %s2205_s27 = smov 0   ;;  %s2207_s28 = smov 0  }
   0x6   :  { %s2209_s29 = smov 0   ;;  %s2211_s30 = smov 0  }
   0x7 LB: > { %s1925_s0 = sadd.s32 4294967295, %s2140_s30   ;;  %s1926_s1 = sadd.s32 4294967294, %s2140_s30   ;;  %s2140_s30 = sphi %s2211_s30, %s21_s30   ;;  %s2136_s29 = sphi %s2209_s29, %s4682_s29   ;;  %s2132_s28 = sphi %s2207_s28, %s4681_s28   ;;  %s2128_s27 = sphi %s2205_s27, %s4680_s27   ;;  %s2124_s26 = sphi %s2203_s26, %s4679_s26   ;;  %s2120_s25 = sphi %s2201_s25, %s4678_s25  }
   0x8   : > { %s33_s7 = sadd.s32 1, %s2136_s29  ;;  %s156_s8 = sadd.s32 1, %s2128_s27 }
   0x9   : > { %p35_p0 = scmp.ge.s32.totalorder %s33_s7, 2  ;;  %p166_p1 = scmp.ne.s32.totalorder %s2128_s27, %s2124_s26 }
   0xa   : > { %p167_p2 = scmp.eq.s32.totalorder %s1925_s0, 1  ;;  %p172_p3 = scmp.ne.s32.totalorder %s2124_s26, %s2120_s25 }
   0xb   : > { %s4684_s7 = smov (%p35_p0, %s33_s7), 0  ;;  %p173_p5 = scmp.eq.s32.totalorder %s1926_s1, 1 }
   0xc   : > { %p2241_p4 = por %p167_p2, %p166_p1  ;;  %s153_s10 = ssub.s32 %s2136_s29, %s4684_s7 }
   0xd   : > { %p1929_p6 = scmp.ge.s32.totalorder %s2140_s30, 1  ;;  %p154_p7 = scmp.eq.s32.totalorder %s153_s10, 0 }
   0xe   : > { %p2248_p8 = por %p173_p5, %p172_p3  ;;  %p238_p9 = scmp.lt.s32.totalorder %s2140_s30, 3 }
   0xf   : > { %s2254_s12 = scalar_select %p154_p7, %s2128_s27, %s156_s8  }
  0x10   : > { %p239_p10 = pnand %p1929_p6, %p238_p9 }
  0x12   : > { %242 = sbr.rel (%p239_p10) target bundleno = 1252 (0x4e4), region = 36 }
  0x19   : > { %s288_s13 = sld [smem:[#allocation5]]  ;;  %p290_p11 = scmp.lt.s32.totalorder %s2132_s28, 1  ;;  %v2150_v0 = vmov 3   ;;  %v4250_v1 = vmov 0   ;;  %v2152_v12 = vmov 4   ;;  %v4247_v19 = vmov 1  }
  0x1a   : > { %2030 = vset.pattern.permute.xlu0 %v2150_v0  ;;  %2029 = vset.pattern.permute.xlu1 %v4250_v1  ;;  %v4245_v31 = vmov 2   ;;  %s300_s1 = sld [smem:[#allocation6]]  ;;  %v4243_v55 = vmov 5   ;;  %v4249_v63 = vlaneseq  ;;  %s285_s24 = sand.u32 1, %s2124_s26  }
  0x1b   : > { %s2259_s14 = scalar_select %p290_p11, %s2132_s28, 1 }
  0x1c   : > { %s3312_s20 = sld [smem:[#allocation5]] }
  0x1d   : > { %s1932_s16 = sshll.u32 %s2259_s14, 4 }
  0x1f   : > { %s1931_s15 = sshll.u32 %s288_s13, 4 }
  0x20   : > { %p292_p12 = scmp.lt.s32.totalorder %s1931_s15, 15  ;;  %p303_p13 = scmp.lt.s32.totalorder %s300_s1, 0 }
  0x22   : > { %s4686_s15 = smov (!%p292_p12, %s1931_s15), 15  ;;  %s4688_s1 = smov (!%p303_p13, %s300_s1), 0 }
  0x23   : > { %s295_s17 = sadd.s32 %s1932_s16, %s4686_s15  ;;  %s1936_s22 = sshll.u32 %s4686_s15, 3 }
  0x24   : > { %s1933_s18 = sshll.u32 %s295_s17, 3  ;;  %s2370_s0 = scalar_lea.vmem %s4240_s4, %s1936_s22 }
  0x25   : > { %s2268_s21 = scalar_lea.vmem %s4238_s2, %s1933_s18  ;;  %v2375_v20 = vld [vmem:[%s2370_s0 + $0x8] sm:$0xff]  ;;  %v2380_v21 = vld [vmem:[%s2370_s0 + $0x20] sm:$0xff]  ;;  %v2385_v22 = vld [vmem:[%s2370_s0 + $0x30] sm:$0xff]  ;;  %s305_s8 = sadd.s32 %s4688_s1, %s2259_s14 }
  0x26   : > { %v2271_v2 = vld [vmem:[%s2268_s21 + $0x10] sm:$0xff]  ;;  %v2274_v3 = vld [vmem:[%s2268_s21] sm:$0xff]  ;;  %v2279_v4 = vld [vmem:[%s2268_s21 + $0x18] sm:$0xff]  ;;  %s1934_s10 = sshll.u32 %s305_s8, 3  ;;  %s1937_s16 = sshll.u32 %s4688_s1, 2 }
  0x27   : > { %380 = vperm.xlu1 %2029, %v2271_v2   ;;  %473 = vperm.xlu0 %2030, %v2274_v3   ;;  %v2284_v5 = vld [vmem:[%s2268_s21 + $0x28] sm:$0xff]  ;;  %v2289_v6 = vld [vmem:[%s2268_s21 + $0x38] sm:$0xff]  ;;  %v2321_v13 = vld [vmem:[%s2268_s21 + $0x20] sm:$0xff]  ;;  %s307_s15 = scalar_lea.vmem %s4239_s3, %s1934_s10  ;;  %s321_s19 = scalar_lea.vmem %s4241_s5, %s1937_s16 }
  0x28   : > { %v2294_v7 = vld [vmem:[%s2268_s21 + $0x48] sm:$0xff]  ;;  %v2299_v8 = vld [vmem:[%s2268_s21 + $0x58] sm:$0xff]  ;;  %v2326_v14 = vld [vmem:[%s2268_s21 + $0x30] sm:$0xff]  ;;  %s1938_s22 = sshll.u32 %s3312_s20, 7  ;;  %s2158_s8 = smov 0  }
  0x29   : > { %v2304_v9 = vld [vmem:[%s2268_s21 + $0x68] sm:$0xff]  ;;  %v2309_v10 = vld [vmem:[%s2268_s21 + $0x78] sm:$0xff]  ;;  %v2331_v15 = vld [vmem:[%s2268_s21 + $0x40] sm:$0xff]  ;;  %328 = sst [smem:[#allocation2]] %s2158_s8 }
  0x2a   : > { %v2314_v11 = vld [vmem:[%s2268_s21 + $0x8] sm:$0xff]  ;;  %v2336_v16 = vld [vmem:[%s2268_s21 + $0x50] sm:$0xff]  ;;  %v2341_v17 = vld [vmem:[%s2268_s21 + $0x60] sm:$0xff] }
  0x2b   : > { %385 = vperm.xlu1 %2029, %v2279_v4   ;;  %485 = vperm.xlu0 %2030, %v2279_v4   ;;  %v2346_v18 = vld [vmem:[%s2268_s21 + $0x70] sm:$0xff]  ;;  %v2390_v23 = vld [vmem:[%s2370_s0 + $0x40] sm:$0xff]  ;;  %v2400_v25 = vld [vmem:[%s2370_s0 + $0x68] sm:$0xff]  ;;  %s3314_s21 = sld [smem:[#allocation6]] }
  0x2c   : > { %v2395_v24 = vld [vmem:[%s2370_s0 + $0x50] sm:$0xff]  ;;  %v2445_v39 = vld [vmem:[%s2370_s0] sm:$0xff]  ;;  %v2454_v42 = vld [vmem:[%s2370_s0 + $0x18] sm:$0xff] }
  0x2d   : > { %v2463_v45 = vld [vmem:[%s2370_s0 + $0x28] sm:$0xff]  ;;  %v2472_v48 = vld [vmem:[%s2370_s0 + $0x38] sm:$0xff]  ;;  %v2492_v57 = vld [vmem:[%s2370_s0 + $0x60] sm:$0xff] }
  0x2e   : > { %v2485_v53 = vld [vmem:[%s2370_s0 + $0x58] sm:$0xff] }
  0x2f   : > { %395 = vperm.xlu1 %2029, %v2284_v5   ;;  %493 = vperm.xlu0 %2030, %v2284_v5   ;;  %v2499_v60 = vld [vmem:[%s2370_s0 + $0x78] sm:$0xff] }
  0x31   : > { %s1939_s23 = sshll.u32 %s3314_s21, 7 }
  0x33   : > { %405 = vperm.xlu1 %2029, %v2289_v6   ;;  %501 = vperm.xlu0 %2030, %v2289_v6  }
  0x37   : > { %415 = vperm.xlu1 %2029, %v2294_v7   ;;  %509 = vperm.xlu0 %2030, %v2294_v7  }
  0x3b   : > { %425 = vperm.xlu1 %2029, %v2299_v8   ;;  %517 = vperm.xlu0 %2030, %v2299_v8  }
  0x3f   : > { %435 = vperm.xlu1 %2029, %v2304_v9   ;;  %525 = vperm.xlu0 %2030, %v2304_v9  }
  0x43   : > { %445 = vperm.xlu1 %2029, %v2309_v10   ;;  %533 = vperm.xlu0 %2030, %v2309_v10  }
  0x47   : > { %2031 = vset.pattern.permute.xlu1 %v2150_v0  ;;  %2033 = vset.pattern.permute.xlu0 %v2152_v12 }
  0x48   : > { %477 = vperm.xlu1 %2031, %v2314_v11   ;;  %657 = vperm.xlu0 %2033, %v2274_v3  }
  0x4c   : > { %481 = vperm.xlu1 %2031, %v2271_v2   ;;  %669 = vperm.xlu0 %2033, %v2279_v4  }
  0x50   : > { %489 = vperm.xlu1 %2031, %v2321_v13   ;;  %677 = vperm.xlu0 %2033, %v2284_v5  }
  0x54   : > { %497 = vperm.xlu1 %2031, %v2326_v14   ;;  %685 = vperm.xlu0 %2033, %v2289_v6  }
  0x58   : > { %505 = vperm.xlu1 %2031, %v2331_v15   ;;  %693 = vperm.xlu0 %2033, %v2294_v7  }
  0x5c   : > { %513 = vperm.xlu1 %2031, %v2336_v16   ;;  %701 = vperm.xlu0 %2033, %v2299_v8  }
  0x60   : > { %521 = vperm.xlu1 %2031, %v2341_v17   ;;  %709 = vperm.xlu0 %2033, %v2304_v9  }
  0x64   : > { %529 = vperm.xlu1 %2031, %v2346_v18   ;;  %717 = vperm.xlu0 %2033, %v2309_v10  }
  0x68   : > { %2032 = vset.pattern.permute.xlu1 %v4247_v19  ;;  %2035 = vset.pattern.permute.xlu0 %v4250_v1 }
  0x69   : > { %569 = vperm.xlu1 %2032, %v2274_v3   ;;  %370 = vperm.xlu0 %2035, %v2274_v3  }
  0x6d   : > { %577 = vperm.xlu1 %2032, %v2271_v2   ;;  %375 = vperm.xlu0 %2035, %v2314_v11  }
  0x71   : > { %581 = vperm.xlu1 %2032, %v2279_v4   ;;  %390 = vperm.xlu0 %2035, %v2321_v13  }
  0x75   : > { %589 = vperm.xlu1 %2032, %v2284_v5   ;;  %400 = vperm.xlu0 %2035, %v2326_v14  }
  0x79   : > { %597 = vperm.xlu1 %2032, %v2289_v6   ;;  %410 = vperm.xlu0 %2035, %v2331_v15  }
  0x7d   : > { %605 = vperm.xlu1 %2032, %v2294_v7   ;;  %420 = vperm.xlu0 %2035, %v2336_v16  }
  0x81   : > { %613 = vperm.xlu1 %2032, %v2299_v8   ;;  %430 = vperm.xlu0 %2035, %v2341_v17  }
  0x85   : > { %621 = vperm.xlu1 %2032, %v2304_v9   ;;  %440 = vperm.xlu0 %2035, %v2346_v18  }
  0x89   : > { %629 = vperm.xlu1 %2032, %v2309_v10   ;;  %972 = vperm.xlu0 %2035, %v2375_v20  }
  0x8d   : > { %2034 = vset.pattern.permute.xlu1 %v2152_v12  ;;  %981 = vperm.xlu0 %2035, %v2380_v21   ;;  %v2520_v12 = vshrl.u32 %v4249_v63, 7  ;;  %v2534_v63 = vld [vmem:[%s307_s15] sm:$0xff] }
  0x8e   : > { %661 = vperm.xlu1 %2034, %v2314_v11  }
  0x91   : > { %987 = vperm.xlu0 %2035, %v2385_v22  }
  0x92   : > { %665 = vperm.xlu1 %2034, %v2271_v2  }
  0x95   : > { %993 = vperm.xlu0 %2035, %v2390_v23  }
  0x96   : > { %673 = vperm.xlu1 %2034, %v2321_v13  }
  0x99   : > { %999 = vperm.xlu0 %2035, %v2395_v24  }
  0x9a   : > { %681 = vperm.xlu1 %2034, %v2326_v14  }
  0x9d   : > { %1008 = vperm.xlu0 %2035, %v2400_v25  }
  0x9e   : > { %689 = vperm.xlu1 %2034, %v2331_v15  }
  0xa1   : > { %2041 = vset.pattern.permute.xlu0 %v4247_v19  ;;  %v4252_v19 = vsub.s32 0, %v2520_v12 }
  0xa2   : > { %697 = vperm.xlu1 %2034, %v2336_v16   ;;  %573 = vperm.xlu0 %2041, %v2314_v11  }
  0xa6   : > { %v2407_v26 = vpop.permute.xlu1 %380  ;;  %705 = vperm.xlu1 %2034, %v2341_v17   ;;  %585 = vperm.xlu0 %2041, %v2321_v13   ;;  %v2411_v27 = vpop.permute.xlu0 %473 }
  0xaa   : > { %v2413_v28 = vpop.permute.xlu1 %385  ;;  %713 = vperm.xlu1 %2034, %v2346_v18   ;;  %593 = vperm.xlu0 %2041, %v2326_v14   ;;  %v2417_v29 = vpop.permute.xlu0 %485 }
  0xae   : > { %v2419_v30 = vpop.permute.xlu1 %395  ;;  %2036 = vset.pattern.permute.xlu1 %v4245_v31  ;;  %601 = vperm.xlu0 %2041, %v2331_v15   ;;  %v2423_v32 = vpop.permute.xlu0 %493 }
  0xaf   : > { %4307 = vst [vmem:[#allocation10_spill] sm:$0xff] %v2423_v32  ;;  %769 = vperm.xlu1 %2036, %v2274_v3  }
  0xb2   : > { %v2426_v33 = vpop.permute.xlu1 %405  ;;  %609 = vperm.xlu0 %2041, %v2336_v16   ;;  %v2429_v34 = vpop.permute.xlu0 %501 }
  0xb3   : > { %4308 = vst [vmem:[#allocation11_spill] sm:$0xff] %v2426_v33  ;;  %4309 = vst [vmem:[#allocation12_spill] sm:$0xff] %v2429_v34  ;;  %777 = vperm.xlu1 %2036, %v2271_v2   ;;  %v4346_v34 = vmov 0  }
  0xb6   : > { %v2432_v35 = vpop.permute.xlu1 %415  ;;  %617 = vperm.xlu0 %2041, %v2341_v17   ;;  %v2435_v36 = vpop.permute.xlu0 %509 }
  0xb7   : > { %4310 = vst [vmem:[#allocation13_spill] sm:$0xff] %v2432_v35  ;;  %4311 = vst [vmem:[#allocation14_spill] sm:$0xff] %v2435_v36  ;;  %781 = vperm.xlu1 %2036, %v2279_v4  }
  0xba   : > { %v2438_v37 = vpop.permute.xlu1 %425  ;;  %625 = vperm.xlu0 %2041, %v2346_v18   ;;  %v2441_v38 = vpop.permute.xlu0 %517 }
  0xbb   : > { %4312 = vst [vmem:[#allocation15_spill] sm:$0xff] %v2438_v37  ;;  %4313 = vst [vmem:[#allocation16_spill] sm:$0xff] %v2441_v38  ;;  %789 = vperm.xlu1 %2036, %v2284_v5   ;;  %v2551_v38 = vrot.slane %v2534_v63, %v4252_v19 }
  0xbe   : > { %v2447_v40 = vpop.permute.xlu1 %435  ;;  %1109 = vperm.xlu0 %2041, %v2445_v39   ;;  %v2450_v41 = vpop.permute.xlu0 %525 }
  0xbf   : > { %4314 = vst [vmem:[#allocation17_spill] sm:$0xff] %v2447_v40  ;;  %4315 = vst [vmem:[#allocation18_spill] sm:$0xff] %v2450_v41  ;;  %797 = vperm.xlu1 %2036, %v2289_v6   ;;  %v2543_v40 = vld [vmem:[%s2370_s0 + $0x10] sm:$0xff] }
  0xc2   : > { %v2456_v43 = vpop.permute.xlu1 %445  ;;  %1118 = vperm.xlu0 %2041, %v2454_v42   ;;  %v2459_v44 = vpop.permute.xlu0 %533 }
  0xc3   : > { %4316 = vst [vmem:[#allocation19_spill] sm:$0xff] %v2456_v43  ;;  %4317 = vst [vmem:[#allocation20_spill] sm:$0xff] %v2459_v44  ;;  %805 = vperm.xlu1 %2036, %v2294_v7   ;;  %v4330_v44 = vmov 0 }
  0xc6   : > { %1124 = vperm.xlu0 %2041, %v2463_v45  }
  0xc7   : > { %v2466_v46 = vpop.permute.xlu1 %477  ;;  %813 = vperm.xlu1 %2036, %v2299_v8   ;;  %v2469_v47 = vpop.permute.xlu0 %657 }
  0xc8   : > { %vm537_vm0 = vcmp.le.f32.partialorder %v2551_v38, %v2466_v46 }
  0xca   : > { %1130 = vperm.xlu0 %2041, %v2472_v48  }
  0xcb   : > { %v2475_v49 = vpop.permute.xlu1 %481  ;;  %821 = vperm.xlu1 %2036, %v2304_v9   ;;  %v2478_v50 = vpop.permute.xlu0 %669 }
  0xce   : > { %1133 = vperm.xlu0 %2041, %v2390_v23  }
  0xcf   : > { %v490_v51 = vpop.permute.xlu1 %489  ;;  %829 = vperm.xlu1 %2036, %v2309_v10   ;;  %v2482_v52 = vpop.permute.xlu0 %677 }
  0xd0   : > { %vm540_vm4 = vcmp.le.f32.partialorder %v2551_v38, %v490_v51 }
  0xd2   : > { %1142 = vperm.xlu0 %2041, %v2485_v53  }
  0xd3   : > { %v498_v54 = vpop.permute.xlu1 %497  ;;  %2037 = vset.pattern.permute.xlu1 %v4243_v55  ;;  %v2489_v56 = vpop.permute.xlu0 %685 }
  0xd4   : > { %4318 = vst [vmem:[#allocation21_spill] sm:$0xff] %v2489_v56  ;;  %861 = vperm.xlu1 %2037, %v2314_v11   ;;  %vm542_vm7 = vcmp.le.f32.partialorder %v2551_v38, %v498_v54 }
  0xd6   : > { %1145 = vperm.xlu0 %2041, %v2492_v57  }
  0xd7   : > { %v506_v58 = vpop.permute.xlu1 %505  ;;  %v2496_v59 = vpop.permute.xlu0 %693 }
  0xd8   : > { %4319 = vst [vmem:[#allocation22_spill] sm:$0xff] %v2496_v59  ;;  %865 = vperm.xlu1 %2037, %v2271_v2   ;;  %vm544_vm10 = vcmp.le.f32.partialorder %v2551_v38, %v506_v58 }
  0xda   : > { %1154 = vperm.xlu0 %2041, %v2499_v60  }
  0xdb   : > { %v2505_v61 = vpop.permute.xlu1 %513  ;;  %v2507_v62 = vpop.permute.xlu0 %701 }
  0xdc   : > { %4320 = vst [vmem:[#allocation23_spill] sm:$0xff] %v2507_v62  ;;  %873 = vperm.xlu1 %2037, %v2321_v13   ;;  %vm546_vm13 = vcmp.le.f32.partialorder %v2551_v38, %v2505_v61 }
  0xde   : > { %2045 = vset.pattern.permute.xlu0 %v4245_v31 }
  0xdf   : > { %v2513_v0 = vpop.permute.xlu1 %521  ;;  %773 = vperm.xlu0 %2045, %v2314_v11   ;;  %v2516_v2 = vpop.permute.xlu0 %709  ;;  %v450_v11 = vsub.s32 3, %v2520_v12 }
  0xe0   : > { %4321 = vst [vmem:[#allocation24_spill] sm:$0xff] %v2516_v2  ;;  %881 = vperm.xlu1 %2037, %v2326_v14  }
  0xe1   : > { %v2546_v2 = vrot.slane %v2534_v63, %v450_v11  ;;  %v4381_v11 = vmov 0 }
  0xe3   : > { %v2522_v55 = vpop.permute.xlu1 %529  ;;  %785 = vperm.xlu0 %2045, %v2321_v13   ;;  %v2525_v31 = vpop.permute.xlu0 %717 }
  0xe4   : > { %4322 = vst [vmem:[#allocation25_spill] sm:$0xff] %v2525_v31  ;;  %889 = vperm.xlu1 %2037, %v2331_v15  }
  0xe7   : > { %793 = vperm.xlu0 %2045, %v2326_v14  }
  0xe8   : > { %2038 = vset.pattern.permute.xlu1 %v4250_v1  ;;  %v2537_v41 = vpop.permute.xlu1 %569  ;;  %v2539_v13 = vpop.permute.xlu0 %370 }
  0xe9   : > { %969 = vperm.xlu1 %2038, %v2445_v39  }
  0xeb   : > { %801 = vperm.xlu0 %2045, %v2331_v15  }
  0xec   : > { %v2554_v14 = vpop.permute.xlu1 %577  ;;  %v376_v1 = vpop.permute.xlu0 %375 }
  0xed   : > { %vm453_vm1 = vcmp.le.f32.partialorder %v376_v1, %v2546_v2  ;;  %975 = vperm.xlu1 %2038, %v2543_v40   ;;  %v4385_v1 = vmov 0 }
  0xee   : > { %vm2560_vm2 = vmand %vm453_vm1, %vm537_vm0  ;;  %vm548_vm0 = vcmp.le.f32.partialorder %v2551_v38, %v2513_v0 }
  0xef   : > { %809 = vperm.xlu0 %2045, %v2336_v16  }
  0xf0   : > { %v2565_v19 = vpop.permute.xlu1 %581  ;;  %v391_v37 = vpop.permute.xlu0 %390 }
  0xf1   : > { %vm456_vm3 = vcmp.le.f32.partialorder %v391_v37, %v2546_v2  ;;  %978 = vperm.xlu1 %2038, %v2454_v42  }
  0xf2   : > { %vm2570_vm5 = vmand %vm456_vm3, %vm540_vm4  ;;  %vm550_vm4 = vcmp.le.f32.partialorder %v2551_v38, %v2522_v55 }
  0xf3   : > { %817 = vperm.xlu0 %2045, %v2341_v17  }
  0xf4   : > { %v2575_v15 = vpop.permute.xlu1 %589  ;;  %v401_v46 = vpop.permute.xlu0 %400 }
  0xf5   : > { %vm458_vm6 = vcmp.le.f32.partialorder %v401_v46, %v2546_v2  ;;  %984 = vperm.xlu1 %2038, %v2463_v45   ;;  %v360_v46 = vld [vmem:[%s2370_s0 + $0x48] sm:$0xff] }
  0xf6   : > { %vm2580_vm8 = vmand %vm458_vm6, %vm542_vm7 }
  0xf7   : > { %825 = vperm.xlu0 %2045, %v2346_v18  }
  0xf8   : > { %v2585_v51 = vpop.permute.xlu1 %597  ;;  %v411_v62 = vpop.permute.xlu0 %410 }
  0xf9   : > { %4329 = vst [vmem:[#allocation26_spill] sm:$0xff] %v2585_v51  ;;  %vm460_vm9 = vcmp.le.f32.partialorder %v411_v62, %v2546_v2  ;;  %990 = vperm.xlu1 %2038, %v2472_v48   ;;  %v4333_v62 = vmov 0 }
  0xfa   : > { %vm2591_vm11 = vmand %vm460_vm9, %vm544_vm10 }
  0xfb   : > { %v4331_v44 = vsel %vm2591_vm11, 4294967295, %v4330_v44  ;;  %1256 = vperm.xlu0 %2045, %v2375_v20  }
  0xfc   : > { %v2596_v54 = vpop.permute.xlu1 %605  ;;  %v421_v43 = vpop.permute.xlu0 %420 }
  0xfd   : > { %4332 = vst [vmem:[#allocation27_spill] sm:$0xff] %v2596_v54  ;;  %vm462_vm12 = vcmp.le.f32.partialorder %v421_v43, %v2546_v2  ;;  %996 = vperm.xlu1 %2038, %v360_v46   ;;  %v4336_v43 = vmov 0 }
  0xfe   : > { %vm2601_vm14 = vmand %vm462_vm12, %vm546_vm13 }
  0xff   : > { %v4334_v62 = vsel %vm2601_vm14, 4294967295, %v4333_v62  ;;  %1265 = vperm.xlu0 %2045, %v2380_v21  }
 0x100   : > { %v2606_v58 = vpop.permute.xlu1 %613  ;;  %v431_v31 = vpop.permute.xlu0 %430 }
 0x101   : > { %4335 = vst [vmem:[#allocation28_spill] sm:$0xff] %v2606_v58  ;;  %vm464_vm15 = vcmp.le.f32.partialorder %v431_v31, %v2546_v2  ;;  %1002 = vperm.xlu1 %2038, %v2485_v53   ;;  %v4340_v58 = vmov 1   ;;  %v4341_v31 = vmov 0 }
 0x102   : > { %vm2612_vm1 = vmand %vm464_vm15, %vm548_vm0 }
 0x103   : > { %v4337_v43 = vsel %vm2612_vm1, 4294967295, %v4336_v43  ;;  %1271 = vperm.xlu0 %2045, %v2385_v22  }
 0x104   : > { %4338 = vst [vmem:[#allocation29_spill] sm:$0xff] %v4337_v43  ;;  %v2617_v61 = vpop.permute.xlu1 %621  ;;  %v441_v36 = vpop.permute.xlu0 %440 }
 0x105   : > { %4339 = vst [vmem:[#allocation30_spill] sm:$0xff] %v2617_v61  ;;  %vm466_vm3 = vcmp.le.f32.partialorder %v441_v36, %v2546_v2  ;;  %2039 = vset.pattern.permute.xlu1 %v4340_v58 }
 0x106   : > { %1112 = vperm.xlu1 %2039, %v2375_v20   ;;  %vm2624_vm6 = vmand %vm466_vm3, %vm550_vm4  ;;  %v4345_v20 = vmov 5  }
 0x107   : > { %v4342_v31 = vsel %vm2624_vm6, 4294967295, %v4341_v31  ;;  %1280 = vperm.xlu0 %2045, %v360_v46  }
 0x108   : > { %4343 = vst [vmem:[#allocation31_spill] sm:$0xff] %v4342_v31  ;;  %v2628_v0 = vpop.permute.xlu1 %629  ;;  %v2630_v35 = vpop.permute.xlu0 %972 }
 0x109   : > { %4344 = vst [vmem:[#allocation32_spill] sm:$0xff] %v2628_v0 }
 0x10a   : > { %1115 = vperm.xlu1 %2039, %v2543_v40  }
 0x10b   : > { %1292 = vperm.xlu0 %2045, %v2400_v25  }
 0x10c   : > { %v2634_v36 = vpop.permute.xlu0 %981 }
 0x10d   : > { %v662_v61 = vpop.permute.xlu1 %661 }
 0x10e   : > { %1121 = vperm.xlu1 %2039, %v2380_v21  }
 0x10f   : > { %2049 = vset.pattern.permute.xlu0 %v4345_v20 }
 0x110   : > { %857 = vperm.xlu0 %2049, %v2274_v3   ;;  %v2639_v55 = vpop.permute.xlu0 %987  ;;  %v2653_v3 = vld [vmem:[%s2370_s0 + $0x70] sm:$0xff]  ;;  %s1930_s0 = sshll.u32 %s285_s24, 1 }
 0x111   : > { %v2641_v54 = vpop.permute.xlu1 %665  ;;  %s3964_s1 = scalar_lea.vmem [#allocation7], %s1930_s0 }
 0x112   : > { %1127 = vperm.xlu1 %2039, %v2385_v22   ;;  %v4256_v22 = vsub.s32 1, %v2520_v12 }
 0x114   : > { %869 = vperm.xlu0 %2049, %v2279_v4   ;;  %v2645_v0 = vpop.permute.xlu0 %993  ;;  %v634_v4 = vsub.s32 4, %v2520_v12 }
 0x115   : > { %v674_v59 = vpop.permute.xlu1 %673 }
 0x116   : > { %2040 = vset.pattern.permute.xlu1 %v4346_v34 }
 0x117   : > { %1005 = vperm.xlu1 %2040, %v2492_v57  }
 0x118   : > { %877 = vperm.xlu0 %2049, %v2284_v5   ;;  %v2650_v21 = vpop.permute.xlu0 %999  ;;  %v2665_v5 = vrot.slane %v2534_v63, %v4256_v22 }
 0x119   : > { %4347 = vst [vmem:[#allocation33_spill] sm:$0xff] %v2650_v21  ;;  %v682_v33 = vpop.permute.xlu1 %681  ;;  %v2668_v21 = vrot.slane %v2534_v63, %v634_v4 }
 0x11a   : > { %vm721_vm7 = vcmp.le.f32.partialorder %v2665_v5, %v662_v61  ;;  %vm724_vm13 = vcmp.le.f32.partialorder %v2665_v5, %v674_v59  ;;  %v834_v61 = vsub.s32 5, %v2520_v12 }
 0x11b   : > { %1011 = vperm.xlu1 %2040, %v2653_v3  }
 0x11c   : > { %885 = vperm.xlu0 %2049, %v2289_v6   ;;  %v2659_v51 = vpop.permute.xlu0 %1008 }
 0x11d   : > { %4348 = vst [vmem:[#allocation34_spill] sm:$0xff] %v2659_v51  ;;  %v690_v34 = vpop.permute.xlu1 %689  ;;  %v4369_v51 = vsub.s32 1, %v2520_v12 }
 0x11f   : > { %1014 = vperm.xlu1 %2040, %v2499_v60  }
 0x120   : > { %893 = vperm.xlu0 %2049, %v2294_v7  }
 0x121   : > { %v698_v56 = vpop.permute.xlu1 %697  ;;  %v574_v32 = vpop.permute.xlu0 %573 }
 0x122   : > { %vm637_vm9 = vcmp.le.f32.partialorder %v574_v32, %v2668_v21  ;;  %vm730_vm15 = vcmp.le.f32.partialorder %v2665_v5, %v698_v56  ;;  %v4414_v32 = vmov 0 }
 0x123   : > { %vm2673_vm10 = vmand %vm637_vm9, %vm721_vm7  ;;  %2042 = vset.pattern.permute.xlu1 %v4340_v58  ;;  %vm726_vm7 = vcmp.le.f32.partialorder %v2665_v5, %v682_v33 }
 0x124   : > { %1136 = vperm.xlu1 %2042, %v360_v46   ;;  %897 = vperm.xlu0 %2049, %v2336_v16   ;;  %v4353_v46 = vmov 0 }
 0x125   : > { %v706_v7 = vpop.permute.xlu1 %705  ;;  %v586_v4 = vpop.permute.xlu0 %585 }
 0x126   : > { %vm640_vm0 = vcmp.le.f32.partialorder %v586_v4, %v2668_v21  ;;  %v2705_v4 = vrot.slane %v2534_v63, %v834_v61  ;;  %v4356_v61 = vmov 0 }
 0x127   : > { %vm2686_vm3 = vmand %vm640_vm0, %vm724_vm13 }
 0x128   : > { %1139 = vperm.xlu1 %2042, %v2395_v24   ;;  %905 = vperm.xlu0 %2049, %v2341_v17   ;;  %v4355_v17 = vmov 2  }
 0x129   : > { %v714_v16 = vpop.permute.xlu1 %713  ;;  %v594_v59 = vpop.permute.xlu0 %593 }
 0x12a   : > { %vm642_vm13 = vcmp.le.f32.partialorder %v594_v59, %v2668_v21 }
 0x12b   : > { %vm2700_vm0 = vmand %vm642_vm13, %vm726_vm7  ;;  %vm728_vm7 = vcmp.le.f32.partialorder %v2665_v5, %v690_v34 }
 0x12c   : > { %v4354_v46 = vsel %vm2700_vm0, 4294967295, %v4353_v46  ;;  %2043 = vset.pattern.permute.xlu1 %v4355_v17  ;;  %917 = vperm.xlu0 %2049, %v2309_v10  }
 0x12d   : > { %1253 = vperm.xlu1 %2043, %v2445_v39   ;;  %v602_v33 = vpop.permute.xlu0 %601  ;;  %v4358_v39 = vmov 0 }
 0x12e   : > { %vm644_vm13 = vcmp.le.f32.partialorder %v602_v33, %v2668_v21  ;;  %v2716_v59 = vpop.permute.xlu1 %769  ;;  %v4361_v33 = vmov 0 }
 0x12f   : > { %vm2718_vm12 = vmand %vm644_vm13, %vm728_vm7 }
 0x130   : > { %v4357_v61 = vsel %vm2718_vm12, 4294967295, %v4356_v61  ;;  %2051 = vset.pattern.permute.xlu0 %v4355_v17 }
 0x131   : > { %1259 = vperm.xlu1 %2043, %v2543_v40   ;;  %v610_v10 = vpop.permute.xlu0 %609 }
 0x132   : > { %vm646_vm7 = vcmp.le.f32.partialorder %v610_v10, %v2668_v21  ;;  %v2732_v34 = vpop.permute.xlu1 %777 }
 0x133   : > { %vm2734_vm13 = vmand %vm646_vm7, %vm730_vm15  ;;  %vm4360_vm15 = vcmp.le.f32.partialorder %v2665_v5, %v706_v7  ;;  %v4365_v7 = vmov 0 }
 0x134   : > { %v4359_v39 = vsel %vm2734_vm13, 4294967295, %v4358_v39 }
 0x135   : > { %1262 = vperm.xlu1 %2043, %v2454_v42   ;;  %v618_v40 = vpop.permute.xlu0 %617 }
 0x136   : > { %vm648_vm12 = vcmp.le.f32.partialorder %v618_v40, %v2668_v21  ;;  %v2746_v56 = vpop.permute.xlu1 %781  ;;  %v367_v40 = vld [vmem:[%s321_s19] sm:$0x7] }
 0x137   : > { %vm2750_vm7 = vmand %vm648_vm12, %vm4360_vm15  ;;  %vm4364_vm12 = vcmp.le.f32.partialorder %v2665_v5, %v714_v16 }
 0x138   : > { %v4362_v33 = vsel %vm2750_vm7, 4294967295, %v4361_v33 }
 0x139   : > { %4363 = vst [vmem:[#allocation35_spill] sm:$0xff] %v4362_v33  ;;  %1268 = vperm.xlu1 %2043, %v2463_v45   ;;  %v626_v42 = vpop.permute.xlu0 %625  ;;  %v2802_v33 = vrot.slane %v367_v40, %v4369_v51 }
 0x13a   : > { %vm650_vm13 = vcmp.le.f32.partialorder %v626_v42, %v2668_v21  ;;  %v2762_v10 = vpop.permute.xlu1 %789 }
 0x13b   : > { %vm2767_vm15 = vmand %vm650_vm13, %vm4364_vm12  ;;  %vm1048_vm13 = vcmp.eq.s32.totalorder %v2645_v0, %v2802_v33 }
 0x13c   : > { %v4366_v7 = vsel %vm2767_vm15, 4294967295, %v4365_v7 }
 0x13d   : > { %4367 = vst [vmem:[#allocation36_spill] sm:$0xff] %v4366_v7  ;;  %1274 = vperm.xlu1 %2043, %v2472_v48   ;;  %v2778_v45 = vpop.permute.xlu0 %1109  ;;  %v854_v48 = vsub.s32 2, %v2520_v12  ;;  %v4368_v7 = vsub.s32 0, %v2520_v12 }
 0x13e   : > { %v2783_v16 = vpop.permute.xlu1 %797 }
 0x13f   : > { %v2798_v31 = vrot.slane %v367_v40, %v4368_v7  ;;  %v2809_v43 = vrot.slane %v367_v40, %v854_v48 }
 0x141   : > { %2044 = vset.pattern.permute.xlu1 %v4340_v58  ;;  %v2788_v42 = vpop.permute.xlu0 %1118  ;;  %vm1028_vm12 = vcmp.eq.s32.totalorder %v2645_v0, %v2798_v31  ;;  %vm1084_vm15 = vcmp.eq.s32.totalorder %v2645_v0, %v2809_v43  ;;  %v2836_v0 = vrot.slane %v2534_v63, %v854_v48 }
 0x142   : > { %1148 = vperm.xlu1 %2044, %v2400_v25   ;;  %v2791_v22 = vpop.permute.xlu1 %805  ;;  %vm1064_vm4 = vmor %vm1028_vm12, %vm1048_vm13 }
 0x143   : > { %vm1100_vm9 = vmor %vm1064_vm4, %vm1084_vm15  ;;  %vm722_vm4 = vcmp.le.f32.partialorder %v2665_v5, %v2641_v54  ;;  %v4378_v54 = vmov 0 }
 0x145   : > { %v2804_v58 = vpop.permute.xlu0 %1124 }
 0x146   : > { %1151 = vperm.xlu1 %2044, %v2653_v3   ;;  %v2807_v25 = vpop.permute.xlu1 %813 }
 0x147   : > { %4370 = vst [vmem:[#allocation37_spill] sm:$0xff] %v2807_v25 }
 0x149   : > { %v2817_v7 = vpop.permute.xlu0 %1130 }
 0x14a   : > { %2046 = vset.pattern.permute.xlu1 %v4355_v17  ;;  %v2820_v51 = vpop.permute.xlu1 %821 }
 0x14b   : > { %4371 = vst [vmem:[#allocation38_spill] sm:$0xff] %v2820_v51  ;;  %1277 = vperm.xlu1 %2046, %v2390_v23   ;;  %v4372_v23 = vmov 0 }
 0x14d   : > { %v1134_v40 = vpop.permute.xlu0 %1133 }
 0x14e   : > { %vm1164_vm7 = vcmp.eq.s32.totalorder %v1134_v40, %v2798_v31  ;;  %vm1196_vm1 = vcmp.eq.s32.totalorder %v1134_v40, %v2802_v33  ;;  %vm1228_vm14 = vcmp.eq.s32.totalorder %v1134_v40, %v2809_v43  ;;  %v2830_v25 = vpop.permute.xlu1 %829 }
 0x14f   : > { %vm1180_vm11 = vmor %vm1100_vm9, %vm1164_vm7  ;;  %1283 = vperm.xlu1 %2046, %v2395_v24   ;;  %vm538_vm9 = vcmp.le.f32.partialorder %v2551_v38, %v2475_v49  ;;  %vm454_vm7 = vcmp.le.f32.partialorder %v2407_v26, %v2546_v2 }
 0x150   : > { %vm1212_vm12 = vmor %vm1180_vm11, %vm1196_vm1  ;;  %vm638_vm11 = vcmp.le.f32.partialorder %v2554_v14, %v2668_v21 }
 0x151   : > { %vm2838_vm6 = vmor %vm1212_vm12, %vm1228_vm14  ;;  %v2842_v51 = vpop.permute.xlu0 %1142 }
 0x152   : > { %v4373_v23 = vsel %vm2838_vm6, 4294967295, %v4372_v23  ;;  %vm738_vm14 = vmand %vm638_vm11, %vm722_vm4  ;;  %vm4374_vm6 = vcmp.le.f32.partialorder %v2732_v34, %v2705_v4  ;;  %v4396_v34 = vmov 0 }
 0x153   : > { %1286 = vperm.xlu1 %2046, %v2485_v53   ;;  %v862_v40 = vpop.permute.xlu1 %861  ;;  %vm554_vm15 = vmand %vm454_vm7, %vm538_vm9  ;;  %v4375_v53 = vmov 0 }
 0x154   : > { %vm921_vm1 = vcmp.le.f32.partialorder %v2836_v0, %v862_v40  ;;  %vm754_vm12 = vmand %vm554_vm15, %vm738_vm14 }
 0x155   : > { %v2852_v24 = vpop.permute.xlu0 %1145 }
 0x157   : > { %2047 = vset.pattern.permute.xlu1 %v4345_v20  ;;  %v866_v63 = vpop.permute.xlu1 %865 }
 0x158   : > { %vm922_vm13 = vcmp.le.f32.partialorder %v2836_v0, %v866_v63  ;;  %901 = vperm.xlu1 %2047, %v2299_v8  }
 0x159   : > { %vm938_vm0 = vmand %vm4374_vm6, %vm922_vm13  ;;  %v2862_v49 = vpop.permute.xlu0 %1154 }
 0x15a   : > { %vm2864_vm4 = vmand %vm754_vm12, %vm938_vm0 }
 0x15b   : > { %v4376_v53 = vsel %vm2864_vm4, 4294967295, %v4375_v53  ;;  %v874_v26 = vpop.permute.xlu1 %873  ;;  %vm4377_vm0 = vmand %vm2560_vm2, %vm2673_vm10  ;;  %vm1220_vm4 = vcmp.eq.s32.totalorder %v2778_v45, %v2809_v43 }
 0x15c   : > { %vm924_vm9 = vcmp.le.f32.partialorder %v2836_v0, %v874_v26  ;;  %2048 = vset.pattern.permute.xlu1 %v4355_v17  ;;  %vm4380_vm12 = vmand %vm2570_vm5, %vm2686_vm3  ;;  %v4449_v26 = vld [vmem:[#allocation11_spill] sm:$0xff] }
 0x15d   : > { %1289 = vperm.xlu1 %2048, %v2492_v57  }
 0x15e   : > { %v774_v14 = vpop.permute.xlu0 %773 }
 0x15f   : > { %vm837_vm11 = vcmp.le.f32.partialorder %v774_v14, %v2705_v4  ;;  %v882_v8 = vpop.permute.xlu1 %881 }
 0x160   : > { %vm937_vm6 = vmand %vm837_vm11, %vm921_vm1  ;;  %vm926_vm13 = vcmp.le.f32.partialorder %v2836_v0, %v882_v8  ;;  %v4450_v8 = vld [vmem:[#allocation12_spill] sm:$0xff] }
 0x161   : > { %vm2880_vm14 = vmand %vm4377_vm0, %vm937_vm6  ;;  %1295 = vperm.xlu1 %2048, %v2653_v3  }
 0x162   : > { %v4379_v54 = vsel %vm2880_vm14, 4294967295, %v4378_v54  ;;  %v786_v57 = vpop.permute.xlu0 %785 }
 0x163   : > { %vm840_vm7 = vcmp.le.f32.partialorder %v786_v57, %v2705_v4  ;;  %v890_v17 = vpop.permute.xlu1 %889 }
 0x164   : > { %vm940_vm15 = vmand %vm840_vm7, %vm924_vm9  ;;  %vm928_vm1 = vcmp.le.f32.partialorder %v2836_v0, %v890_v17  ;;  %vm4383_vm9 = vnez %v4354_v46 }
 0x165   : > { %vm2892_vm11 = vmand %vm4380_vm12, %vm940_vm15  ;;  %1298 = vperm.xlu1 %2048, %v2499_v60  }
 0x166   : > { %v4382_v11 = vsel %vm2892_vm11, 4294967295, %v4381_v11  ;;  %v794_v6 = vpop.permute.xlu0 %793  ;;  %vm4384_vm6 = vmand %vm2580_vm8, %vm4383_vm9  ;;  %vm4387_vm9 = vnez %v4331_v44  ;;  %vm1223_vm11 = vcmp.eq.s32.totalorder %v2788_v42, %v2809_v43 }
 0x167   : > { %vm842_vm2 = vcmp.le.f32.partialorder %v794_v6, %v2705_v4  ;;  %v4408_v6 = vmov 0 }
 0x168   : > { %vm942_vm10 = vmand %vm842_vm2, %vm926_vm13  ;;  %v970_v3 = vpop.permute.xlu1 %969  ;;  %vm1156_vm13 = vcmp.eq.s32.totalorder %v2778_v45, %v2798_v31 }
 0x169   : > { %vm2903_vm0 = vmand %vm4384_vm6, %vm942_vm10  ;;  %vm1020_vm5 = vcmp.eq.s32.totalorder %v970_v3, %v2798_v31  ;;  %vm1040_vm3 = vcmp.eq.s32.totalorder %v970_v3, %v2802_v33  ;;  %vm1076_vm7 = vcmp.eq.s32.totalorder %v970_v3, %v2809_v43  ;;  %2050 = vset.pattern.permute.xlu1 %v4345_v20  ;;  %vm4388_vm6 = vnez %v4357_v61 }
 0x16a   : > { %v4386_v1 = vsel %vm2903_vm0, 4294967295, %v4385_v1  ;;  %vm1056_vm15 = vmor %vm1020_vm5, %vm1040_vm3  ;;  %909 = vperm.xlu1 %2050, %v2304_v9   ;;  %v802_v60 = vpop.permute.xlu0 %801  ;;  %v4390_v9 = vmov 0  ;;  %v4412_v3 = vmov 0 }
 0x16b   : > { %vm1092_vm8 = vmor %vm1056_vm15, %vm1076_vm7  ;;  %vm844_vm12 = vcmp.le.f32.partialorder %v802_v60, %v2705_v4  ;;  %vm1021_vm7 = vcmp.eq.s32.totalorder %v2630_v35, %v2798_v31  ;;  %vm1041_vm15 = vcmp.eq.s32.totalorder %v2630_v35, %v2802_v33 }
 0x16c   : > { %vm1172_vm2 = vmor %vm1092_vm8, %vm1156_vm13  ;;  %v2915_v37 = vpop.permute.xlu1 %975 }
 0x16d   : > { %vm944_vm10 = vmand %vm844_vm12, %vm928_vm1  ;;  %vm1188_vm1 = vcmp.eq.s32.totalorder %v2778_v45, %v2802_v33  ;;  %v4430_v45 = vmov 0 }
 0x16e   : > { %vm4389_vm5 = vmand %vm4387_vm9, %vm4388_vm6  ;;  %913 = vperm.xlu1 %2050, %v2346_v18   ;;  %v2929_v20 = vpop.permute.xlu0 %809 }
 0x16f   : > { %vm2924_vm3 = vmand %vm4389_vm5, %vm944_vm10  ;;  %vm1159_vm5 = vcmp.eq.s32.totalorder %v2788_v42, %v2798_v31 }
 0x170   : > { %v4391_v9 = vsel %vm2924_vm3, 4294967295, %v4390_v9  ;;  %v979_v44 = vpop.permute.xlu1 %978  ;;  %vm1204_vm10 = vmor %vm1172_vm2, %vm1188_vm1 }
 0x171   : > { %vm1023_vm13 = vcmp.eq.s32.totalorder %v979_v44, %v2798_v31  ;;  %vm1043_vm8 = vcmp.eq.s32.totalorder %v979_v44, %v2802_v33  ;;  %vm1079_vm12 = vcmp.eq.s32.totalorder %v979_v44, %v2809_v43  ;;  %vm2942_vm6 = vmor %vm1021_vm7, %vm1041_vm15 }
 0x172   : > { %vm1059_vm9 = vmor %vm1023_vm13, %vm1043_vm8  ;;  %v2940_v18 = vpop.permute.xlu0 %817 }
 0x173   : > { %vm1095_vm3 = vmor %vm1059_vm9, %vm1079_vm12  ;;  %vm1191_vm12 = vcmp.eq.s32.totalorder %v2788_v42, %v2802_v33  ;;  %v4406_v42 = vmov 0 }
 0x174   : > { %vm2950_vm0 = vmor %vm1095_vm3, %vm1159_vm5  ;;  %v985_v61 = vpop.permute.xlu1 %984  ;;  %vm1161_vm3 = vcmp.eq.s32.totalorder %v2804_v58, %v2798_v31 }
 0x175   : > { %vm1025_vm2 = vcmp.eq.s32.totalorder %v985_v61, %v2798_v31  ;;  %vm1045_vm1 = vcmp.eq.s32.totalorder %v985_v61, %v2802_v33  ;;  %vm1081_vm7 = vcmp.eq.s32.totalorder %v985_v61, %v2809_v43  ;;  %vm2957_vm15 = vmor %vm1204_vm10, %vm1220_vm4 }
 0x176   : > { %v4397_v34 = vsel %vm2957_vm15, 4294967295, %v4396_v34  ;;  %vm1061_vm13 = vmor %vm1025_vm2, %vm1045_vm1  ;;  %v2961_v48 = vpop.permute.xlu0 %825  ;;  %vm1044_vm15 = vcmp.eq.s32.totalorder %v2634_v36, %v2802_v33 }
 0x177   : > { %vm1097_vm8 = vmor %vm1061_vm13, %vm1081_vm7  ;;  %vm1077_vm7 = vcmp.eq.s32.totalorder %v2630_v35, %v2809_v43  ;;  %vm1163_vm13 = vcmp.eq.s32.totalorder %v2817_v7, %v2798_v31  ;;  %v4402_v35 = vmov 0 }
 0x178   : > { %vm2967_vm9 = vmor %vm1097_vm8, %vm1161_vm3  ;;  %v991_v40 = vpop.permute.xlu1 %990  ;;  %vm1024_vm8 = vcmp.eq.s32.totalorder %v2634_v36, %v2798_v31 }
 0x179   : > { %vm1027_vm4 = vcmp.eq.s32.totalorder %v991_v40, %v2798_v31  ;;  %vm1047_vm10 = vcmp.eq.s32.totalorder %v991_v40, %v2802_v33  ;;  %vm1083_vm5 = vcmp.eq.s32.totalorder %v991_v40, %v2809_v43  ;;  %vm1207_vm2 = vmor %vm2950_vm0, %vm1191_vm12 }
 0x17a   : > { %vm1063_vm1 = vmor %vm1027_vm4, %vm1047_vm10  ;;  %v1257_v63 = vpop.permute.xlu0 %1256  ;;  %vm1193_vm10 = vcmp.eq.s32.totalorder %v2804_v58, %v2802_v33 }
 0x17b   : > { %vm1099_vm3 = vmor %vm1063_vm1, %vm1083_vm5  ;;  %vm1022_vm5 = vcmp.eq.s32.totalorder %v2915_v37, %v2798_v31 }
 0x17c   : > { %vm2986_vm14 = vmor %vm1099_vm3, %vm1163_vm13  ;;  %v2990_v14 = vpop.permute.xlu1 %996 }
 0x17d   : > { %vm2992_vm0 = vmor %vm1207_vm2, %vm1223_vm11  ;;  %vm1225_vm11 = vcmp.eq.s32.totalorder %v2804_v58, %v2809_v43  ;;  %vm1042_vm2 = vcmp.eq.s32.totalorder %v2915_v37, %v2802_v33  ;;  %v4459_v58 = vmov 0 }
 0x17e   : > { %v4403_v35 = vsel %vm2992_vm0, 4294967295, %v4402_v35  ;;  %vm2998_vm12 = vmor %vm2942_vm6, %vm1077_vm7  ;;  %v3002_v57 = vpop.permute.xlu0 %1265 }
 0x17f   : > { %vm3004_vm4 = vmor %vm1024_vm8, %vm1044_vm15  ;;  %vm1167_vm8 = vcmp.eq.s32.totalorder %v2842_v51, %v2798_v31 }
 0x180   : > { %v4407_v42 = vsel %vm3004_vm4, 4294967295, %v4406_v42  ;;  %v1003_v17 = vpop.permute.xlu1 %1002  ;;  %vm1209_vm6 = vmor %vm2967_vm9, %vm1193_vm10  ;;  %vm1195_vm9 = vcmp.eq.s32.totalorder %v2817_v7, %v2802_v33 }
 0x181   : > { %vm1031_vm15 = vcmp.eq.s32.totalorder %v1003_v17, %v2798_v31  ;;  %vm1051_vm1 = vcmp.eq.s32.totalorder %v1003_v17, %v2802_v33  ;;  %vm1087_vm7 = vcmp.eq.s32.totalorder %v1003_v17, %v2809_v43  ;;  %vm3021_vm13 = vmor %vm1209_vm6, %vm1225_vm11  ;;  %vm1301_vm11 = vcmp.eq.s32.totalorder %v1257_v63, %v2798_v31 }
 0x182   : > { %v4409_v6 = vsel %vm3021_vm13, 4294967295, %v4408_v6  ;;  %vm1067_vm3 = vmor %vm1031_vm15, %vm1051_vm1  ;;  %v3037_v60 = vpop.permute.xlu0 %1271  ;;  %vm1227_vm15 = vcmp.eq.s32.totalorder %v2817_v7, %v2809_v43  ;;  %vm4416_vm13 = vcmp.le.f32.partialorder %v2665_v5, %v2469_v47  ;;  %v4457_v17 = vmov 0 }
 0x183   : > { %vm1103_vm0 = vmor %vm1067_vm3, %vm1087_vm7 }
 0x184   : > { %vm3029_vm10 = vmor %vm1022_vm5, %vm1042_vm2  ;;  %vm452_vm2 = vcmp.le.f32.partialorder %v2539_v13, %v2546_v2  ;;  %v4420_v13 = vmov 0 }
 0x185   : > { %vm3033_vm4 = vmor %vm1103_vm0, %vm1167_vm8  ;;  %v1113_v44 = vpop.permute.xlu1 %1112  ;;  %vm636_vm0 = vcmp.le.f32.partialorder %v2537_v41, %v2668_v21  ;;  %vm1080_vm8 = vcmp.eq.s32.totalorder %v2634_v36, %v2809_v43  ;;  %v4417_v41 = vmov 0 }
 0x186   : > { %v4413_v3 = vsel %vm3033_vm4, 4294967295, %v4412_v3  ;;  %vm1211_vm5 = vmor %vm2986_vm14, %vm1195_vm9  ;;  %vm1157_vm1 = vcmp.eq.s32.totalorder %v1113_v44, %v2798_v31  ;;  %vm1189_vm7 = vcmp.eq.s32.totalorder %v1113_v44, %v2802_v33  ;;  %vm1333_vm9 = vcmp.eq.s32.totalorder %v1257_v63, %v2802_v33  ;;  %v3085_v47 = vpop.permute.xlu0 %1280 }
 0x187   : > { %vm3053_vm3 = vmor %vm1211_vm5, %vm1227_vm15  ;;  %vm1221_vm4 = vcmp.eq.s32.totalorder %v1113_v44, %v2809_v43  ;;  %vm4419_vm5 = vcmp.le.f32.partialorder %v2551_v38, %v2411_v27  ;;  %v4425_v27 = vmov 0  ;;  %v4463_v44 = vld [vmem:[#allocation22_spill] sm:$0xff] }
 0x188   : > { %v4415_v32 = vsel %vm3053_vm3, 4294967295, %v4414_v32  ;;  %vm1173_vm14 = vmor %vm2998_vm12, %vm1157_vm1  ;;  %vm1365_vm12 = vcmp.eq.s32.totalorder %v1257_v63, %v2809_v43  ;;  %v4438_v63 = vmov 0 }
 0x189   : > { %vm1205_vm6 = vmor %vm1173_vm14, %vm1189_vm7  ;;  %v1116_v36 = vpop.permute.xlu1 %1115  ;;  %vm4422_vm7 = vnez %v4407_v42  ;;  %v4452_v42 = vmov 0 }
 0x18a   : > { %vm3067_vm15 = vmand %vm636_vm0, %vm4416_vm13  ;;  %v3110_v61 = vpop.permute.xlu0 %1292 }
 0x18b   : > { %v4418_v41 = vsel %vm3067_vm15, 4294967295, %v4417_v41  ;;  %vm3074_vm3 = vmand %vm452_vm2, %vm4419_vm5  ;;  %vm1078_vm2 = vcmp.eq.s32.totalorder %v2915_v37, %v2809_v43  ;;  %v4428_v37 = vmov 0 }
 0x18c   : > { %v4421_v13 = vsel %vm3074_vm3, 4294967295, %v4420_v13  ;;  %vm1237_vm1 = vmor %vm1205_vm6, %vm1221_vm4  ;;  %vm1026_vm3 = vcmp.eq.s32.totalorder %v2639_v55, %v2798_v31  ;;  %vm1046_vm4 = vcmp.eq.s32.totalorder %v2639_v55, %v2802_v33  ;;  %vm4275_vm6 = vmmov 1  }
 0x18d   : > { %vm3081_vm14 = vmor %vm4422_vm7, %vm1080_vm8  ;;  %v1122_v46 = vpop.permute.xlu1 %1121 }
 0x18e   : > { %vm1317_vm13 = vmor %vm1237_vm1, %vm1301_vm11  ;;  %vm1158_vm11 = vcmp.eq.s32.totalorder %v1116_v36, %v2798_v31  ;;  %vm1190_vm1 = vcmp.eq.s32.totalorder %v1116_v36, %v2802_v33 }
 0x18f   : > { %vm1349_vm0 = vmor %vm1317_vm13, %vm1333_vm9  ;;  %vm1222_vm9 = vcmp.eq.s32.totalorder %v1116_v36, %v2809_v43  ;;  %v4466_v36 = vld [vmem:[#allocation14_spill] sm:$0xff] }
 0x190   : > { %vm1381_vm5 = vmor %vm1349_vm0, %vm1365_vm12  ;;  %vm639_vm12 = vcmp.le.f32.partialorder %v2565_v19, %v2668_v21  ;;  %v4432_v19 = vmov 0 }
 0x191   : > { %vm3094_vm8 = vmxor %vm1381_vm5, %vm4275_vm6  ;;  %vm1160_vm5 = vcmp.eq.s32.totalorder %v1122_v46, %v2798_v31  ;;  %vm723_vm6 = vcmp.le.f32.partialorder %v2665_v5, %v2478_v50  ;;  %v4437_v50 = vld [vmem:[#allocation10_spill] sm:$0xff]  ;;  %v1128_v40 = vpop.permute.xlu1 %1127 }
 0x192   : > { %v4426_v27 = vsel %vm3094_vm8, 4294967295, %v4425_v27  ;;  %vm1094_vm7 = vmor %vm3029_vm10, %vm1078_vm2  ;;  %vm1192_vm10 = vcmp.eq.s32.totalorder %v1122_v46, %v2802_v33  ;;  %vm455_vm2 = vcmp.le.f32.partialorder %v2413_v28, %v2546_v2  ;;  %v4435_v28 = vmov 0 }
 0x193   : > { %vm3106_vm13 = vmor %vm1026_vm3, %vm1046_vm4  ;;  %vm539_vm4 = vcmp.le.f32.partialorder %v2551_v38, %v2417_v29  ;;  %v858_v29 = vpop.permute.xlu0 %857  ;;  %vm541_vm15 = vcmp.le.f32.partialorder %v2551_v38, %v4437_v50  ;;  %v4477_v50 = vmov 0 }
 0x194   : > { %v4429_v37 = vsel %vm3106_vm13, 4294967295, %v4428_v37  ;;  %vm1174_vm0 = vmor %vm1094_vm7, %vm1158_vm11  ;;  %vm1304_vm11 = vcmp.eq.s32.totalorder %v3002_v57, %v2798_v31  ;;  %vm457_vm13 = vcmp.le.f32.partialorder %v2419_v30, %v2546_v2  ;;  %v4443_v30 = vld [vmem:[#allocation21_spill] sm:$0xff] }
 0x195   : > { %vm1206_vm8 = vmor %vm1174_vm0, %vm1190_vm1  ;;  %vm1224_vm0 = vcmp.eq.s32.totalorder %v1122_v46, %v2809_v43  ;;  %v4467_v46 = vmov 0 }
 0x196   : > { %vm3119_vm3 = vmor %vm1206_vm8, %vm1222_vm9  ;;  %vm1336_vm8 = vcmp.eq.s32.totalorder %v3002_v57, %v2802_v33 }
 0x197   : > { %v4431_v45 = vsel %vm3119_vm3, 4294967295, %v4430_v45  ;;  %vm1176_vm1 = vmor %vm3081_vm14, %vm1160_vm5  ;;  %vm1368_vm5 = vcmp.eq.s32.totalorder %v3002_v57, %v2809_v43  ;;  %vm4451_vm3 = vcmp.le.f32.partialorder %v2716_v59, %v2705_v4  ;;  %v870_v57 = vpop.permute.xlu0 %869  ;;  %v1006_v59 = vpop.permute.xlu1 %1005 }
 0x198   : > { %vm3131_vm7 = vmand %vm639_vm12, %vm723_vm6  ;;  %vm725_vm12 = vcmp.le.f32.partialorder %v2665_v5, %v2482_v52  ;;  %v4441_v52 = vmov 0 }
 0x199   : > { %v4433_v19 = vsel %vm3131_vm7, 4294967295, %v4432_v19  ;;  %vm1208_vm9 = vmor %vm1176_vm1, %vm1192_vm10  ;;  %vm641_vm10 = vcmp.le.f32.partialorder %v2575_v15, %v2668_v21  ;;  %v4444_v15 = vld [vmem:[#allocation26_spill] sm:$0xff] }
 0x19a   : > { %vm1240_vm14 = vmor %vm1208_vm9, %vm1224_vm0  ;;  %vm4440_vm0 = vmmov 1  }
 0x19b   : > { %vm3144_vm6 = vmand %vm455_vm2, %vm539_vm4  ;;  %vm1082_vm2 = vcmp.eq.s32.totalorder %v2639_v55, %v2809_v43  ;;  %v4446_v55 = vmov 0  ;;  %v878_v7 = vpop.permute.xlu0 %877 }
 0x19c   : > { %v4436_v28 = vsel %vm3144_vm6, 4294967295, %v4435_v28  ;;  %vm1320_vm1 = vmor %vm1240_vm14, %vm1304_vm11  ;;  %vm920_vm11 = vcmp.le.f32.partialorder %v2836_v0, %v858_v29  ;;  %vm643_vm14 = vcmp.le.f32.partialorder %v4444_v15, %v2668_v21  ;;  %v4474_v29 = vmov 0 }
 0x19d   : > { %vm1352_vm7 = vmor %vm1320_vm1, %vm1336_vm8  ;;  %vm727_vm8 = vcmp.le.f32.partialorder %v2665_v5, %v4443_v30  ;;  %v4501_v15 = vmov 0 }
 0x19e   : > { %vm1384_vm4 = vmor %vm1352_vm7, %vm1368_vm5 }
 0x19f   : > { %vm3158_vm9 = vmand %vm641_vm10, %vm725_vm12  ;;  %vm4448_vm10 = vnez %v4429_v37  ;;  %v3245_v37 = vpop.permute.xlu1 %1011  ;;  %v886_v30 = vpop.permute.xlu0 %885 }
 0x1a0   : > { %v4439_v63 = vsel %vm3158_vm9, 4294967295, %v4438_v63  ;;  %vm3163_vm6 = vmxor %vm1384_vm4, %vm4440_vm0  ;;  %vm1162_vm4 = vcmp.eq.s32.totalorder %v1128_v40, %v2798_v31  ;;  %vm459_vm9 = vcmp.le.f32.partialorder %v4449_v26, %v2546_v2  ;;  %vm543_vm0 = vcmp.le.f32.partialorder %v2551_v38, %v4450_v8 }
 0x1a1   : > { %v4442_v52 = vsel %vm3163_vm6, 4294967295, %v4441_v52  ;;  %vm3176_vm12 = vmand %vm457_vm13, %vm541_vm15  ;;  %vm1194_vm15 = vcmp.eq.s32.totalorder %v1128_v40, %v2802_v33  ;;  %v4505_v26 = vmov 0 }
 0x1a2   : > { %v4447_v55 = vsel %vm3176_vm12, 4294967295, %v4446_v55  ;;  %vm1098_vm1 = vmor %vm4448_vm10, %vm1082_vm2  ;;  %vm4454_vm2 = vnez %v4421_v13  ;;  %vm4455_vm10 = vnez %v4418_v41  ;;  %vm1306_vm12 = vcmp.eq.s32.totalorder %v3037_v60, %v2798_v31  ;;  %v4464_v41 = vld [vmem:[#allocation27_spill] sm:$0xff]  ;;  %v4465_v13 = vld [vmem:[#allocation13_spill] sm:$0xff] }
 0x1a3   : > { %vm936_vm5 = vmand %vm4451_vm3, %vm920_vm11 }
 0x1a4   : > { %vm3191_vm13 = vmand %vm643_vm14, %vm727_vm8  ;;  %vm1338_vm8 = vcmp.eq.s32.totalorder %v3037_v60, %v2802_v33 }
 0x1a5   : > { %v4453_v42 = vsel %vm3191_vm13, 4294967295, %v4452_v42  ;;  %vm4456_vm6 = vmand %vm4454_vm2, %vm4455_vm10  ;;  %vm1226_vm13 = vcmp.eq.s32.totalorder %v1128_v40, %v2809_v43  ;;  %vm729_vm10 = vcmp.le.f32.partialorder %v2665_v5, %v4463_v44  ;;  %v4482_v40 = vmov 0 }
 0x1a6   : > { %vm3200_vm7 = vmand %vm4456_vm6, %vm936_vm5  ;;  %vm4462_vm5 = vnez %v4436_v28  ;;  %vm1049_vm6 = vcmp.eq.s32.totalorder %v2990_v14, %v2802_v33  ;;  %v4492_v28 = vmov 0 }
 0x1a7   : > { %v4458_v17 = vsel %vm3200_vm7, 4294967295, %v4457_v17  ;;  %vm1178_vm3 = vmor %vm1098_vm1, %vm1162_vm4 }
 0x1a8   : > { %vm3206_vm11 = vmand %vm459_vm9, %vm543_vm0  ;;  %vm645_vm9 = vcmp.le.f32.partialorder %v4464_v41, %v2668_v21  ;;  %vm1370_vm0 = vcmp.eq.s32.totalorder %v3037_v60, %v2809_v43  ;;  %v4470_v60 = vmov 0 }
 0x1a9   : > { %v4460_v58 = vsel %vm3206_vm11, 4294967295, %v4459_v58  ;;  %vm1210_vm14 = vmor %vm1178_vm3, %vm1194_vm15  ;;  %vm461_vm15 = vcmp.le.f32.partialorder %v4465_v13, %v2546_v2  ;;  %vm545_vm3 = vcmp.le.f32.partialorder %v2551_v38, %v4466_v36  ;;  %vm1029_vm11 = vcmp.eq.s32.totalorder %v2990_v14, %v2798_v31 }
 0x1aa   : > { %vm1242_vm1 = vmor %vm1210_vm14, %vm1226_vm13  ;;  %v3373_v13 = vstv %s1938_s22  ;;  %v1432_v36 = vstv %s1939_s23 }
 0x1ab   : > { %vm1322_vm4 = vmor %vm1242_vm1, %vm1306_vm12  ;;  %vm4469_vm12 = vmmov 1   ;;  %vm923_vm1 = vcmp.le.f32.partialorder %v2836_v0, %v870_v57  ;;  %v4509_v57 = vmov 0 }
 0x1ac   : > { %vm1354_vm7 = vmor %vm1322_vm4, %vm1338_vm8 }
 0x1ad   : > { %vm3227_vm2 = vmand %vm645_vm9, %vm729_vm10  ;;  %vm4479_vm9 = vcmp.le.f32.partialorder %v2746_v56, %v2705_v4  ;;  %v1015_v56 = vpop.permute.xlu1 %1014 }
 0x1ae   : > { %v4468_v46 = vsel %vm3227_vm2, 4294967295, %v4467_v46  ;;  %vm1386_vm13 = vmor %vm1354_vm7, %vm1370_vm0  ;;  %vm1052_vm2 = vcmp.eq.s32.totalorder %v1006_v59, %v2802_v33 }
 0x1af   : > { %vm3236_vm14 = vmxor %vm1386_vm13, %vm4469_vm12  ;;  %vm1032_vm12 = vcmp.eq.s32.totalorder %v1006_v59, %v2798_v31 }
 0x1b0   : > { %v4471_v60 = vsel %vm3236_vm14, 4294967295, %v4470_v60  ;;  %vm3247_vm4 = vmand %vm461_vm15, %vm545_vm3  ;;  %vm1088_vm3 = vcmp.eq.s32.totalorder %v1006_v59, %v2809_v43  ;;  %v1399_v59 = vadd.s32 16, %v2520_v12 }
 0x1b1   : > { %v4475_v29 = vsel %vm3247_vm4, 4294967295, %v4474_v29  ;;  %vm3255_vm13 = vmor %vm1029_vm11, %vm1049_vm6  ;;  %vm4480_vm4 = vnez %v4433_v19  ;;  %vm4484_vm11 = vnez %v4453_v42  ;;  %vm4485_vm6 = vnez %v4460_v58 }
 0x1b2   : > { %v4478_v50 = vsel %vm3255_vm13, 4294967295, %v4477_v50  ;;  %vm939_vm15 = vmand %vm4479_vm9, %vm923_vm1  ;;  %vm925_vm1 = vcmp.le.f32.partialorder %v2836_v0, %v878_v7  ;;  %vm1168_vm9 = vcmp.eq.s32.totalorder %v2852_v24, %v2798_v31  ;;  %v4486_v19 = vmov 0 }
 0x1b3   : > { %vm4481_vm8 = vmand %vm4462_vm5, %vm4480_vm4  ;;  %vm1085_vm5 = vcmp.eq.s32.totalorder %v2990_v14, %v2809_v43  ;;  %v894_v14 = vpop.permute.xlu0 %893  ;;  %v4514_v58 = vlaneseq }
 0x1b4   : > { %vm3270_vm0 = vmand %vm4481_vm8, %vm939_vm15  ;;  %vm4488_vm8 = vcmp.le.f32.partialorder %v2762_v10, %v2705_v4  ;;  %v4497_v10 = vmov 0 }
 0x1b5   : > { %v4483_v40 = vsel %vm3270_vm0, 4294967295, %v4482_v40  ;;  %vm1068_vm7 = vmor %vm1032_vm12, %vm1052_vm2  ;;  %vm4489_vm2 = vnez %v4447_v55  ;;  %vm4490_vm12 = vnez %v4439_v63  ;;  %v1137_v63 = vpop.permute.xlu1 %1136  ;;  %v4504_v55 = vld [vmem:[#allocation32_spill] sm:$0xff]  ;;  %v3369_v44 = vand.u32 127, %v4514_v58 }
 0x1b6   : > { %vm1104_vm13 = vmor %vm1068_vm7, %vm1088_vm3  ;;  %vm927_vm7 = vcmp.le.f32.partialorder %v2836_v0, %v886_v30  ;;  %vm4495_vm3 = vnez %v4475_v29  ;;  %v4515_v29 = vld [vmem:[#allocation19_spill] sm:$0xff]  ;;  %v4519_v30 = vld [vmem:[#allocation20_spill] sm:$0xff]  ;;  %v4544_v58 = vmov 0 }
 0x1b7   : > { %vm3281_vm10 = vmor %vm1104_vm13, %vm1168_vm9  ;;  %vm4494_vm13 = vnez %v4468_v46  ;;  %v898_v8 = vpop.permute.xlu0 %897 }
 0x1b8   : > { %v4487_v19 = vsel %vm3281_vm10, 4294967295, %v4486_v19  ;;  %vm941_vm4 = vmand %vm4488_vm8, %vm925_vm1  ;;  %vm4496_vm10 = vnez %v4478_v50  ;;  %vm1035_vm8 = vcmp.eq.s32.totalorder %v1015_v56, %v2798_v31  ;;  %v4517_v50 = vmov 0 }
 0x1b9   : > { %vm4491_vm15 = vmand %vm4489_vm2, %vm4490_vm12  ;;  %vm4499_vm2 = vcmp.le.f32.partialorder %v2783_v16, %v2705_v4  ;;  %v4503_v16 = vld [vmem:[#allocation25_spill] sm:$0xff]  ;;  %v3354_v42 = vpop.permute.xlu1 %1139 }
 0x1ba   : > { %vm3295_vm14 = vmand %vm4491_vm15, %vm941_vm4  ;;  %vm1055_vm4 = vcmp.eq.s32.totalorder %v1015_v56, %v2802_v33  ;;  %vm1091_vm15 = vcmp.eq.s32.totalorder %v1015_v56, %v2809_v43  ;;  %vm735_vm0 = vcmp.le.f32.partialorder %v2665_v5, %v4503_v16  ;;  %v1403_v56 = vadd.s32 48, %v2520_v12  ;;  %v4532_v16 = vld [vmem:[#allocation33_spill] sm:$0xff] }
 0x1bb   : > { %v4493_v28 = vsel %vm3295_vm14, 4294967295, %v4492_v28  ;;  %vm3306_vm1 = vmor %vm4496_vm10, %vm1085_vm5  ;;  %vm929_vm14 = vcmp.le.f32.partialorder %v2836_v0, %v894_v14  ;;  %v906_v41 = vpop.permute.xlu0 %905 }
 0x1bc   : > { %v4498_v10 = vsel %vm3306_vm1, 4294967295, %v4497_v10  ;;  %vm943_vm12 = vmand %vm4499_vm2, %vm927_vm7  ;;  %vm1171_vm7 = vcmp.eq.s32.totalorder %v2862_v49, %v2798_v31  ;;  %vm651_vm1 = vcmp.le.f32.partialorder %v4504_v55, %v2668_v21  ;;  %v4533_v55 = vld [vmem:[#allocation29_spill] sm:$0xff] }
 0x1bd   : > { %vm4500_vm10 = vmand %vm4485_vm6, %vm4484_vm11  ;;  %vm1165_vm6 = vcmp.eq.s32.totalorder %v1137_v63, %v2798_v31  ;;  %v1254_v46 = vpop.permute.xlu1 %1253 }
 0x1be   : > { %vm3325_vm5 = vmand %vm4500_vm10, %vm943_vm12  ;;  %vm1197_vm12 = vcmp.eq.s32.totalorder %v1137_v63, %v2802_v33 }
 0x1bf   : > { %v4502_v15 = vsel %vm3325_vm5, 4294967295, %v4501_v15  ;;  %vm1071_vm9 = vmor %vm1035_vm8, %vm1055_vm4  ;;  %vm4507_vm8 = vcmp.le.f32.partialorder %v2791_v22, %v2705_v4  ;;  %v1401_v22 = vadd.s32 32, %v2520_v12  ;;  %v918_v14 = vpop.permute.xlu0 %917 }
 0x1c0   : > { %vm1107_vm2 = vmor %vm1071_vm9, %vm1091_vm15 }
 0x1c1   : > { %vm3336_vm11 = vmor %vm1107_vm2, %vm1171_vm7  ;;  %vm4513_vm7 = vnez %v4498_v10  ;;  %v3378_v7 = vadd.s32 %v3373_v13, %v1401_v22 }
 0x1c2   : > { %v4506_v26 = vsel %vm3336_vm11, 4294967295, %v4505_v26  ;;  %vm945_vm4 = vmand %vm4507_vm8, %vm929_vm14 }
 0x1c3   : > { %vm4508_vm9 = vmand %vm4495_vm3, %vm4494_vm13  ;;  %vm1229_vm13 = vcmp.eq.s32.totalorder %v1137_v63, %v2809_v43  ;;  %vm1309_vm3 = vcmp.eq.s32.totalorder %v3085_v47, %v2798_v31  ;;  %v3417_v63 = vadd.s32 %v3373_v13, %v1403_v56  ;;  %v4558_v56 = vmov 0 }
 0x1c4   : > { %vm3350_vm15 = vmand %vm4508_vm9, %vm945_vm4  ;;  %vm930_vm9 = vcmp.le.f32.partialorder %v2836_v0, %v898_v8  ;;  %v4535_v8 = vld [vmem:[#allocation35_spill] sm:$0xff] }
 0x1c5   : > { %v4510_v57 = vsel %vm3350_vm15, 4294967295, %v4509_v57  ;;  %vm3356_vm10 = vmand %vm651_vm1, %vm735_vm0  ;;  %vm1341_vm0 = vcmp.eq.s32.totalorder %v3085_v47, %v2802_v33 }
 0x1c6   : > { %vm1181_vm14 = vmor %vm4513_vm7, %vm1165_vm6  ;;  %vm1373_vm6 = vcmp.eq.s32.totalorder %v3085_v47, %v2809_v43  ;;  %vm467_vm7 = vcmp.le.f32.partialorder %v4515_v29, %v2546_v2  ;;  %v3393_v47 = vadd.s32 %v1432_v36, %v3369_v44 }
 0x1c7   : > { %vm1213_vm2 = vmor %vm1181_vm14, %vm1197_vm12  ;;  %vm4516_vm14 = vmmov 1  }
 0x1c8   : > { %vm1245_vm8 = vmor %vm1213_vm2, %vm1229_vm13  ;;  %vm551_vm13 = vcmp.le.f32.partialorder %v2551_v38, %v4519_v30  ;;  %v1400_v30 = vadd.s32 24, %v2520_v12 }
 0x1c9   : > { %vm1325_vm1 = vmor %vm1245_vm8, %vm1309_vm3  ;;  %vm846_vm3 = vcmp.le.f32.partialorder %v2929_v20, %v2705_v4  ;;  %v4523_v20 = vmov 0  ;;  %vm932_vm8 = vcmp.le.f32.partialorder %v2836_v0, %v906_v41  ;;  %v4554_v41 = vmov 0  }
 0x1ca   : > { %vm1357_vm4 = vmor %vm1325_vm1, %vm1341_vm0  ;;  %vm1470_vm1 = vcmp.lt.s32.totalorder %v3378_v7, %v3393_v47 }
 0x1cb   : > { %vm1389_vm12 = vmor %vm1357_vm4, %vm1373_vm6  ;;  %vm4520_vm6 = vnez %v4334_v62  ;;  %vm4521_vm4 = vnez %v4359_v39  ;;  %v1260_v62 = vpop.permute.xlu1 %1259  ;;  %v4530_v39 = vmov 0 }
 0x1cc   : > { %vm3384_vm2 = vmxor %vm1389_vm12, %vm4516_vm14 }
 0x1cd   : > { %v4518_v50 = vsel %vm3384_vm2, 4294967295, %v4517_v50  ;;  %vm946_vm0 = vmand %vm846_vm3, %vm930_vm9  ;;  %vm848_vm3 = vcmp.le.f32.partialorder %v2940_v18, %v2705_v4  ;;  %vm1030_vm2 = vcmp.eq.s32.totalorder %v4532_v16, %v2798_v31  ;;  %v3456_v18 = vadd.s32 %v3373_v13, %v2520_v12 }
 0x1ce   : > { %vm4522_vm12 = vmand %vm4520_vm6, %vm4521_vm4  ;;  %vm935_vm4 = vcmp.le.f32.partialorder %v2836_v0, %v918_v14 }
 0x1cf   : > { %vm3407_vm11 = vmand %vm4522_vm12, %vm946_vm0  ;;  %vm4527_vm0 = vnez %v4382_v11  ;;  %v4538_v11 = vmov 0  ;;  %v1263_v22 = vpop.permute.xlu1 %1262 }
 0x1d0   : > { %v4524_v20 = vsel %vm3407_vm11, 4294967295, %v4523_v20  ;;  %vm3411_vm5 = vmand %vm467_vm7, %vm551_vm13  ;;  %vm4528_vm7 = vnez %v4442_v52  ;;  %v4541_v52 = vmov 0 }
 0x1d1   : > { %vm767_vm9 = vmand %vm3411_vm5, %vm3356_vm10  ;;  %vm4534_vm5 = vnez %v4533_v55  ;;  %vm4536_vm10 = vnez %v4535_v8 }
 0x1d2   : > { %vm4529_vm13 = vmand %vm4527_vm0, %vm4528_vm7  ;;  %vm1050_vm0 = vcmp.eq.s32.totalorder %v4532_v16, %v2802_v33 }
 0x1d3   : > { %vm3430_vm6 = vmand %vm4529_vm13, %vm1470_vm1  ;;  %vm1300_vm1 = vcmp.eq.s32.totalorder %v1254_v46, %v2798_v31 }
 0x1d4   : > { %v4531_v39 = vsel %vm3430_vm6, 4294967295, %v4530_v39  ;;  %vm948_vm12 = vmand %vm848_vm3, %vm932_vm8  ;;  %vm1472_vm8 = vcmp.lt.s32.totalorder %v3417_v63, %v3393_v47  ;;  %vm4540_vm3 = vcmp.le.f32.partialorder %v2830_v25, %v2705_v4  ;;  %v4549_v25 = vmov 0 }
 0x1d5   : > { %vm4537_vm15 = vmand %vm4534_vm5, %vm4536_vm10 }
 0x1d6   : > { %vm3442_vm11 = vmand %vm4537_vm15, %vm948_vm12  ;;  %vm1332_vm15 = vcmp.eq.s32.totalorder %v1254_v46, %v2802_v33  ;;  %vm4543_vm12 = vnez %v4397_v34  ;;  %v4552_v34 = vmov 0 }
 0x1d7   : > { %v4539_v11 = vsel %vm3442_vm11, 4294967295, %v4538_v11  ;;  %vm951_vm7 = vmand %vm4540_vm3, %vm935_vm4  ;;  %vm4546_vm4 = vnez %v4386_v1  ;;  %vm4547_vm3 = vnez %v4471_v60  ;;  %v3487_v1 = vadd.s32 %v3373_v13, %v1399_v59 }
 0x1d8   : > { %vm3459_vm13 = vmand %vm767_vm9, %vm951_vm7  ;;  %vm1364_vm7 = vcmp.eq.s32.totalorder %v1254_v46, %v2809_v43  ;;  %v1398_v60 = vadd.s32 8, %v2520_v12  ;;  %v1269_v46 = vpop.permute.xlu1 %1268  ;;  %v4568_v59 = vmov 0 }
 0x1d9   : > { %v4542_v52 = vsel %vm3459_vm13, 4294967295, %v4541_v52  ;;  %vm1316_vm5 = vmor %vm4543_vm12, %vm1300_vm1  ;;  %vm1466_vm1 = vcmp.lt.s32.totalorder %v3456_v18, %v3393_v47  ;;  %vm4551_vm13 = vnez %v4458_v17 }
 0x1da   : > { %vm3466_vm10 = vmor %vm1030_vm2, %vm1050_vm0  ;;  %vm1302_vm0 = vcmp.eq.s32.totalorder %v1260_v62, %v2798_v31 }
 0x1db   : > { %v4545_v58 = vsel %vm3466_vm10, 4294967295, %v4544_v58  ;;  %vm4548_vm11 = vmand %vm4546_vm4, %vm4547_vm3  ;;  %vm1366_vm4 = vcmp.eq.s32.totalorder %v1260_v62, %v2809_v43  ;;  %vm1468_vm3 = vcmp.lt.s32.totalorder %v3487_v1, %v3393_v47 }
 0x1dc   : > { %vm3475_vm6 = vmand %vm4548_vm11, %vm1472_vm8  ;;  %vm1334_vm11 = vcmp.eq.s32.totalorder %v1260_v62, %v2802_v33  ;;  %v3536_v62 = vadd.s32 %v3373_v13, %v1400_v30  ;;  %v1275_v55 = vpop.permute.xlu1 %1274 }
 0x1dd   : > { %v4550_v25 = vsel %vm3475_vm6, 4294967295, %v4549_v25  ;;  %vm1348_vm9 = vmor %vm1316_vm5, %vm1332_vm15  ;;  %vm4555_vm15 = vnez %v4531_v39 }
 0x1de   : > { %vm1380_vm12 = vmor %vm1348_vm9, %vm1364_vm7  ;;  %v1502_v17 = vsel %vm4555_vm15, 1, %v4554_v41  ;;  %vm1086_vm7 = vcmp.eq.s32.totalorder %v4532_v16, %v2809_v43  ;;  %v1402_v16 = vadd.s32 40, %v2520_v12 }
 0x1df   : > { %vm1434_vm2 = vmxor %vm1380_vm12, %vm4516_vm14  ;;  %vm1303_vm12 = vcmp.eq.s32.totalorder %v1263_v22, %v2798_v31 }
 0x1e0   : > { %vm1450_vm10 = vmand %vm4551_vm13, %vm1434_vm2  ;;  %vm4556_vm13 = vnez %v4431_v45  ;;  %v3514_v45 = vadd.s32 %v3373_v13, %v1398_v60  ;;  %vm4557_vm2 = vnez %v4376_v53  ;;  %v1504_v53 = vsel %vm3475_vm6, 1, %v4554_v41 }
 0x1e1   : > { %vm3490_vm8 = vmand %vm1450_vm10, %vm1466_vm1  ;;  %vm4566_vm6 = vnez %v4426_v27  ;;  %v4576_v27 = vmov 0 }
 0x1e2   : > { %v4553_v34 = vsel %vm3490_vm8, 4294967295, %v4552_v34  ;;  %v1498_v36 = vsel %vm3490_vm8, 1, %v4554_v41  ;;  %vm1318_vm5 = vmor %vm4556_vm13, %vm1302_vm0  ;;  %vm4560_vm13 = vnez %v4545_v58  ;;  %v4571_v58 = vmov 0 }
 0x1e3   : > { %v3503_v29 = vadd.s32 %v1502_v17, %v1498_v36  ;;  %vm1350_vm10 = vmor %vm1318_vm5, %vm1334_vm11  ;;  %vm1335_vm11 = vcmp.eq.s32.totalorder %v1263_v22, %v2802_v33 }
 0x1e4   : > { %vm1382_vm9 = vmor %vm1350_vm10, %vm1366_vm4  ;;  %vm4563_vm10 = vnez %v4403_v35  ;;  %v3553_v35 = vadd.s32 %v3373_v13, %v1402_v16  ;;  %v4583_v16 = vld [vmem:[#allocation23_spill] sm:$0xff] }
 0x1e5   : > { %vm1436_vm1 = vmxor %vm1382_vm9, %vm4516_vm14  ;;  %vm1367_vm9 = vcmp.eq.s32.totalorder %v1263_v22, %v2809_v43  ;;  %v3570_v22 = vpop.permute.xlu1 %1148 }
 0x1e6   : > { %vm1452_vm0 = vmand %vm4557_vm2, %vm1436_vm1 }
 0x1e7   : > { %vm3519_vm15 = vmand %vm1452_vm0, %vm1468_vm3  ;;  %vm1305_vm0 = vcmp.eq.s32.totalorder %v1269_v46, %v2798_v31 }
 0x1e8   : > { %v4559_v56 = vsel %vm3519_vm15, 4294967295, %v4558_v56  ;;  %vm3525_vm5 = vmor %vm4560_vm13, %vm1086_vm7  ;;  %v1500_v10 = vsel %vm3519_vm15, 1, %v4554_v41  ;;  %vm1467_vm7 = vcmp.lt.s32.totalorder %v3514_v45, %v3393_v47  ;;  %vm1469_vm13 = vcmp.lt.s32.totalorder %v3536_v62, %v3393_v47 }
 0x1e9   : > { %vm1319_vm4 = vmor %vm4563_vm10, %vm1303_vm12  ;;  %v3541_v8 = vadd.s32 %v1504_v53, %v1500_v10  ;;  %vm4564_vm12 = vnez %v4483_v40  ;;  %vm4570_vm15 = vnez %v4409_v6  ;;  %v1404_v40 = vadd.s32 56, %v2520_v12 }
 0x1ea   : > { %vm1351_vm3 = vmor %vm1319_vm4, %vm1335_vm11  ;;  %vm1337_vm11 = vcmp.eq.s32.totalorder %v1269_v46, %v2802_v33  ;;  %vm4565_vm4 = vnez %v4379_v54  ;;  %v1405_v10 = vadd.s32 64, %v2520_v12  ;;  %v4618_v54 = vmov 0 }
 0x1eb   : > { %vm1383_vm1 = vmor %vm1351_vm3, %vm1367_vm9  ;;  %v3590_v6 = vadd.s32 %v3373_v13, %v1404_v40  ;;  %v4586_v40 = vld [vmem:[#allocation16_spill] sm:$0xff] }
 0x1ec   : > { %vm1437_vm2 = vmxor %vm1383_vm1, %vm4516_vm14  ;;  %vm1166_vm1 = vcmp.eq.s32.totalorder %v3354_v42, %v2798_v31 }
 0x1ed   : > { %vm1453_vm10 = vmand %vm4564_vm12, %vm1437_vm2 }
 0x1ee   : > { %vm4567_vm3 = vmand %vm4565_vm4, %vm4566_vm6  ;;  %vm1369_vm6 = vcmp.eq.s32.totalorder %v1269_v46, %v2809_v43  ;;  %v4579_v46 = vld [vmem:[#allocation34_spill] sm:$0xff] }
 0x1ef   : > { %vm3561_vm9 = vmand %vm4567_vm3, %vm1467_vm7  ;;  %vm1471_vm7 = vcmp.lt.s32.totalorder %v3553_v35, %v3393_v47 }
 0x1f0   : > { %v4569_v59 = vsel %vm3561_vm9, 4294967295, %v4568_v59  ;;  %vm1321_vm2 = vmor %vm4570_vm15, %vm1305_vm0  ;;  %vm1307_vm0 = vcmp.eq.s32.totalorder %v1275_v55, %v2798_v31  ;;  %v1499_v60 = vsel %vm3561_vm9, 1, %v4554_v41 }
 0x1f1   : > { %vm3572_vm12 = vmand %vm1453_vm10, %vm1469_vm13  ;;  %vm4575_vm13 = vnez %v4493_v28  ;;  %v3605_v28 = vpop.permute.xlu1 %1151 }
 0x1f2   : > { %v4572_v58 = vsel %vm3572_vm12, 4294967295, %v4571_v58  ;;  %vm1353_vm8 = vmor %vm1321_vm2, %vm1337_vm11  ;;  %vm1339_vm11 = vcmp.eq.s32.totalorder %v1275_v55, %v2802_v33  ;;  %v1501_v30 = vsel %vm3572_vm12, 1, %v4554_v41  ;;  %vm547_vm12 = vcmp.le.f32.partialorder %v2551_v38, %v4586_v40 }
 0x1f3   : > { %vm1385_vm4 = vmor %vm1353_vm8, %vm1369_vm6  ;;  %vm4578_vm8 = vnez %v4415_v32  ;;  %vm1371_vm6 = vcmp.eq.s32.totalorder %v1275_v55, %v2809_v43  ;;  %v4581_v32 = vmov 0  ;;  %v4584_v55 = vld [vmem:[#allocation28_spill] sm:$0xff]  ;;  %v1408_v40 = vadd.s32 88, %v2520_v12 }
 0x1f4   : > { %vm3581_vm3 = vmor %vm3525_vm5, %vm1166_vm1 }
 0x1f5   : > { %vm1439_vm15 = vmxor %vm1385_vm4, %vm4516_vm14  ;;  %v1278_v14 = vpop.permute.xlu1 %1277 }
 0x1f6   : > { %vm1455_vm10 = vmand %vm4575_vm13, %vm1439_vm15  ;;  %vm1033_vm15 = vcmp.eq.s32.totalorder %v4579_v46, %v2798_v31  ;;  %vm1053_vm13 = vcmp.eq.s32.totalorder %v4579_v46, %v2802_v33 }
 0x1f7   : > { %vm3593_vm2 = vmand %vm1455_vm10, %vm1471_vm7  ;;  %vm1473_vm7 = vcmp.lt.s32.totalorder %v3590_v6, %v3393_v47 }
 0x1f8   : > { %v4577_v27 = vsel %vm3593_vm2, 4294967295, %v4576_v27  ;;  %v1503_v36 = vsel %vm3593_vm2, 1, %v4554_v41  ;;  %vm1323_vm5 = vmor %vm4578_vm8, %vm1307_vm0  ;;  %vm1034_vm0 = vcmp.eq.s32.totalorder %v3245_v37, %v2798_v31  ;;  %vm4580_vm8 = vnez %v4502_v15 }
 0x1f9   : > { %v3607_v17 = vadd.s32 %v1503_v36, %v1499_v60  ;;  %vm1355_vm1 = vmor %vm1323_vm5, %vm1339_vm11  ;;  %vm1054_vm11 = vcmp.eq.s32.totalorder %v3245_v37, %v2802_v33  ;;  %v3668_v36 = vadd.s32 %v3373_v13, %v1405_v10  ;;  %v1407_v10 = vadd.s32 80, %v2520_v12 }
 0x1fa   : > { %vm1387_vm4 = vmor %vm1355_vm1, %vm1371_vm6  ;;  %vm1198_vm1 = vcmp.eq.s32.totalorder %v3354_v42, %v2802_v33  ;;  %v4609_v60 = vmov 0 }
 0x1fb   : > { %vm1441_vm10 = vmxor %vm1387_vm4, %vm4516_vm14  ;;  %vm1089_vm4 = vcmp.eq.s32.totalorder %v4579_v46, %v2809_v43  ;;  %vm1230_vm14 = vcmp.eq.s32.totalorder %v3354_v42, %v2809_v43  ;;  %v4591_v46 = vmov 0  ;;  %v4593_v42 = vmov 0 }
 0x1fc   : > { %vm1457_vm5 = vmand %vm4580_vm8, %vm1441_vm10 }
 0x1fd   : > { %vm3625_vm6 = vmand %vm1457_vm5, %vm1473_vm7  ;;  %vm1090_vm7 = vcmp.eq.s32.totalorder %v3245_v37, %v2809_v43  ;;  %v4585_v37 = vld [vmem:[#allocation15_spill] sm:$0xff] }
 0x1fe   : > { %v4582_v32 = vsel %vm3625_vm6, 4294967295, %v4581_v32  ;;  %vm1069_vm2 = vmor %vm1033_vm15, %vm1053_vm13  ;;  %v1505_v15 = vsel %vm3625_vm6, 1, %v4554_v41  ;;  %vm731_vm15 = vcmp.le.f32.partialorder %v2665_v5, %v4583_v16  ;;  %vm647_vm13 = vcmp.le.f32.partialorder %v4584_v55, %v2668_v21 }
 0x1ff   : > { %vm1070_vm10 = vmor %vm1034_vm0, %vm1054_vm11  ;;  %v3640_v53 = vadd.s32 %v1505_v15, %v1501_v30  ;;  %vm1169_vm0 = vcmp.eq.s32.totalorder %v3570_v22, %v2798_v31  ;;  %vm1170_vm11 = vcmp.eq.s32.totalorder %v3605_v28, %v2798_v31  ;;  %vm463_vm6 = vcmp.le.f32.partialorder %v4585_v37, %v2546_v2  ;;  %v1284_v30 = vpop.permute.xlu1 %1283 }
 0x200   : > { %vm1214_vm8 = vmor %vm3581_vm3, %vm1198_vm1  ;;  %vm1308_vm1 = vcmp.eq.s32.totalorder %v1278_v14, %v2798_v31  ;;  %v3694_v16 = vadd.s32 %v3373_v13, %v1407_v10  ;;  %v4603_v37 = vmov 0  ;;  %v4615_v10 = vld [vmem:[#allocation24_spill] sm:$0xff] }
 0x201   : > { %vm1105_vm5 = vmor %vm1069_vm2, %vm1089_vm4  ;;  %vm1340_vm4 = vcmp.eq.s32.totalorder %v1278_v14, %v2802_v33 }
 0x202   : > { %vm1106_vm9 = vmor %vm1070_vm10, %vm1090_vm7 }
 0x203   : > { %vm3659_vm3 = vmand %vm647_vm13, %vm731_vm15 }
 0x204   : > { %vm3663_vm2 = vmor %vm1214_vm8, %vm1230_vm14  ;;  %vm4597_vm14 = vnez %v4373_v23  ;;  %v4600_v23 = vmov 0 }
 0x205   : > { %vm3671_vm7 = vmor %vm1105_vm5, %vm1169_vm0  ;;  %vm1372_vm5 = vcmp.eq.s32.totalorder %v1278_v14, %v2809_v43  ;;  %vm1474_vm0 = vcmp.lt.s32.totalorder %v3668_v36, %v3393_v47  ;;  %v1287_v14 = vpop.permute.xlu1 %1286 }
 0x206   : > { %v4592_v46 = vsel %vm3671_vm7, 4294967295, %v4591_v46  ;;  %vm3675_vm10 = vmor %vm1106_vm9, %vm1170_vm11  ;;  %vm4598_vm11 = vmmov 1  }
 0x207   : > { %v4594_v42 = vsel %vm3675_vm10, 4294967295, %v4593_v42  ;;  %vm3679_vm15 = vmand %vm463_vm6, %vm547_vm12  ;;  %vm1310_vm10 = vcmp.eq.s32.totalorder %v1284_v30, %v2798_v31  ;;  %vm4599_vm12 = vnez %v4391_v9 }
 0x208   : > { %vm1324_vm13 = vmor %vm4597_vm14, %vm1308_vm1  ;;  %vm1342_vm1 = vcmp.eq.s32.totalorder %v1284_v30, %v2802_v33 }
 0x209   : > { %vm1356_vm8 = vmor %vm1324_vm13, %vm1340_vm4  ;;  %vm1202_vm13 = vcmp.eq.s32.totalorder %v3605_v28, %v2802_v33 }
 0x20a   : > { %vm1388_vm9 = vmor %vm1356_vm8, %vm1372_vm5  ;;  %vm1374_vm5 = vcmp.eq.s32.totalorder %v1284_v30, %v2809_v43  ;;  %v3755_v30 = vadd.s32 %v3373_v13, %v1408_v40 }
 0x20b   : > { %vm1442_vm7 = vmxor %vm1388_vm9, %vm4598_vm11 }
 0x20c   : > { %vm1458_vm6 = vmand %vm4599_vm12, %vm1442_vm7  ;;  %vm1201_vm7 = vcmp.eq.s32.totalorder %v3570_v22, %v2802_v33 }
 0x20d   : > { %vm3697_vm14 = vmand %vm1458_vm6, %vm1474_vm0  ;;  %vm1476_vm0 = vcmp.lt.s32.totalorder %v3694_v16, %v3393_v47 }
 0x20e   : > { %v4601_v23 = vsel %vm3697_vm14, 4294967295, %v4600_v23  ;;  %v1506_v55 = vsel %vm3697_vm14, 1, %v4554_v41  ;;  %vm1326_vm4 = vmor %vm3663_vm2, %vm1310_vm10  ;;  %vm4602_vm10 = vnez %v4592_v46  ;;  %v902_v46 = vpop.permute.xlu1 %901 }
 0x20f   : > { %v3711_v9 = vadd.s32 %v3503_v29, %v1506_v55  ;;  %vm1358_vm8 = vmor %vm1326_vm4, %vm1342_vm1  ;;  %vm4605_vm1 = vnez %v4594_v42  ;;  %v4606_v29 = vmov 0 }
 0x210   : > { %vm1390_vm9 = vmor %vm1358_vm8, %vm1374_vm5  ;;  %vm4608_vm8 = vnez %v4524_v20 }
 0x211   : > { %vm1444_vm12 = vmxor %vm1390_vm9, %vm4598_vm11  ;;  %vm1199_vm9 = vcmp.eq.s32.totalorder %v2842_v51, %v2802_v33 }
 0x212   : > { %vm3723_vm6 = vmor %vm4602_vm10, %vm1201_vm7  ;;  %vm1311_vm7 = vcmp.eq.s32.totalorder %v1287_v14, %v2798_v31 }
 0x213   : > { %v4604_v37 = vsel %vm3723_vm6, 4294967295, %v4603_v37  ;;  %vm3729_vm4 = vmor %vm4605_vm1, %vm1202_vm13  ;;  %vm1231_vm13 = vcmp.eq.s32.totalorder %v2842_v51, %v2809_v43  ;;  %vm1343_vm1 = vcmp.eq.s32.totalorder %v1287_v14, %v2802_v33  ;;  %v4612_v51 = vld [vmem:[#allocation37_spill] sm:$0xff] }
 0x214   : > { %v4607_v29 = vsel %vm3729_vm4, 4294967295, %v4606_v29  ;;  %vm1460_vm5 = vmand %vm4608_vm8, %vm1444_vm12  ;;  %vm4611_vm12 = vnez %v4413_v3  ;;  %vm1375_vm4 = vcmp.eq.s32.totalorder %v1287_v14, %v2809_v43  ;;  %v1290_v3 = vpop.permute.xlu1 %1289  ;;  %v4616_v14 = vld [vmem:[#allocation30_spill] sm:$0xff] }
 0x215   : > { %vm3738_vm2 = vmand %vm1460_vm5, %vm1476_vm0  ;;  %vm931_vm5 = vcmp.le.f32.partialorder %v2836_v0, %v902_v46 }
 0x216   : > { %v4610_v60 = vsel %vm3738_vm2, 4294967295, %v4609_v60  ;;  %v1508_v20 = vsel %vm3738_vm2, 1, %v4554_v41  ;;  %vm1215_vm10 = vmor %vm4611_vm12, %vm1199_vm9  ;;  %vm4613_vm2 = vcmp.le.f32.partialorder %v4612_v51, %v2705_v4 }
 0x217   : > { %vm1247_vm8 = vmor %vm1215_vm10, %vm1231_vm13  ;;  %v3752_v42 = vadd.s32 %v3541_v8, %v1508_v20  ;;  %vm1477_vm13 = vcmp.lt.s32.totalorder %v3755_v30, %v3393_v47  ;;  %v1409_v8 = vadd.s32 96, %v2520_v12  ;;  %vm733_vm10 = vcmp.le.f32.partialorder %v2665_v5, %v4615_v10 }
 0x218   : > { %vm1327_vm0 = vmor %vm1247_vm8, %vm1311_vm7  ;;  %v4623_v5 = vmov 0 }
 0x219   : > { %vm1359_vm14 = vmor %vm1327_vm0, %vm1343_vm1  ;;  %vm1234_vm1 = vcmp.eq.s32.totalorder %v3605_v28, %v2809_v43  ;;  %v3808_v15 = vadd.s32 %v3373_v13, %v1409_v8 }
 0x21a   : > { %vm1391_vm6 = vmor %vm1359_vm14, %vm1375_vm4  ;;  %vm649_vm14 = vcmp.le.f32.partialorder %v4616_v14, %v2668_v21  ;;  %vm1233_vm4 = vcmp.eq.s32.totalorder %v3570_v22, %v2809_v43  ;;  %v4625_v22 = vmov 0  ;;  %v1411_v21 = vadd.s32 112, %v2520_v12 }
 0x21b   : > { %vm947_vm9 = vmand %vm4613_vm2, %vm931_vm5  ;;  %vm4620_vm5 = vnez %v4607_v29  ;;  %v1412_v29 = vadd.s32 120, %v2520_v12 }
 0x21c   : > { %vm4614_vm7 = vmand %vm3679_vm15, %vm3659_vm3  ;;  %vm1200_vm3 = vcmp.eq.s32.totalorder %v2852_v24, %v2802_v33  ;;  %vm4617_vm15 = vnez %v4604_v37  ;;  %v1296_v37 = vpop.permute.xlu1 %1295 }
 0x21d   : > { %vm963_vm12 = vmand %vm4614_vm7, %vm947_vm9  ;;  %vm1312_vm7 = vcmp.eq.s32.totalorder %v1290_v3, %v2798_v31 }
 0x21e   : > { %vm1445_vm2 = vmxor %vm1391_vm6, %vm4598_vm11 }
 0x21f   : > { %vm1461_vm8 = vmand %vm963_vm12, %vm1445_vm2  ;;  %vm1232_vm2 = vcmp.eq.s32.totalorder %v2852_v24, %v2809_v43  ;;  %v4628_v24 = vld [vmem:[#allocation17_spill] sm:$0xff] }
 0x220   : > { %vm3783_vm0 = vmor %vm4617_vm15, %vm1233_vm4  ;;  %vm1376_vm15 = vcmp.eq.s32.totalorder %v1290_v3, %v2809_v43  ;;  %v1299_v40 = vpop.permute.xlu1 %1298 }
 0x221   : > { %v4619_v54 = vsel %vm3783_vm0, 4294967295, %v4618_v54  ;;  %vm3789_vm9 = vmor %vm4620_vm5, %vm1234_vm1  ;;  %vm1344_vm1 = vcmp.eq.s32.totalorder %v1290_v3, %v2802_v33  ;;  %vm1478_vm5 = vcmp.lt.s32.totalorder %v3808_v15, %v3393_v47  ;;  %vm1314_vm0 = vcmp.eq.s32.totalorder %v1296_v37, %v2798_v31 }
 0x222   : > { %vm3793_vm6 = vmand %vm1461_vm8, %vm1477_vm13  ;;  %vm4627_vm13 = vnez %v4487_v19  ;;  %v4629_v19 = vld [vmem:[#allocation18_spill] sm:$0xff] }
 0x223   : > { %v4624_v5 = vsel %vm3793_vm6, 4294967295, %v4623_v5  ;;  %vm3798_vm12 = vmand %vm649_vm14, %vm733_vm10  ;;  %v1509_v28 = vsel %vm3793_vm6, 1, %v4554_v41 }
 0x224   : > { %v4626_v22 = vsel %vm3798_vm12, 4294967295, %v4625_v22  ;;  %vm1216_vm4 = vmor %vm4627_vm13, %vm1200_vm3  ;;  %v1521_v55 = vadd.s32 %v3640_v53, %v1509_v28  ;;  %vm465_vm3 = vcmp.le.f32.partialorder %v4628_v24, %v2546_v2  ;;  %vm549_vm13 = vcmp.le.f32.partialorder %v2551_v38, %v4629_v19  ;;  %v910_v51 = vpop.permute.xlu1 %909  ;;  %v4658_v28 = vld [vmem:[#allocation31_spill] sm:$0xff] }
 0x225   : > { %vm1248_vm10 = vmor %vm1216_vm4, %vm1232_vm2  ;;  %vm4630_vm2 = vnez %v4539_v11  ;;  %v4631_v53 = vmov 0  ;;  %v4636_v11 = vmov 0 }
 0x226   : > { %vm1328_vm14 = vmor %vm1248_vm10, %vm1312_vm7 }
 0x227   : > { %vm1360_vm8 = vmor %vm1328_vm14, %vm1344_vm1  ;;  %vm1346_vm1 = vcmp.eq.s32.totalorder %v1296_v37, %v2802_v33  ;;  %vm1203_vm14 = vcmp.eq.s32.totalorder %v2862_v49, %v2802_v33 }
 0x228   : > { %vm1392_vm6 = vmor %vm1360_vm8, %vm1376_vm15  ;;  %vm4635_vm8 = vnez %v4619_v54  ;;  %v4648_v54 = vld [vmem:[#allocation38_spill] sm:$0xff] }
 0x229   : > { %vm1446_vm12 = vmxor %vm1392_vm6, %vm4598_vm11 }
 0x22a   : > { %vm1462_vm7 = vmand %vm4630_vm2, %vm1446_vm12  ;;  %vm1313_vm12 = vcmp.eq.s32.totalorder %v3110_v61, %v2798_v31  ;;  %vm1347_vm2 = vcmp.eq.s32.totalorder %v1299_v40, %v2802_v33 }
 0x22b   : > { %vm3825_vm4 = vmand %vm1462_vm7, %vm1478_vm5  ;;  %vm4641_vm7 = vnez %v4626_v22  ;;  %v3918_v22 = vadd.s32 %v3373_v13, %v1411_v21 }
 0x22c   : > { %v4632_v53 = vsel %vm3825_vm4, 4294967295, %v4631_v53  ;;  %v1510_v46 = vsel %vm3825_vm4, 1, %v4554_v41  ;;  %vm1330_vm6 = vmor %vm3789_vm9, %vm1314_vm0  ;;  %vm1315_vm0 = vcmp.eq.s32.totalorder %v1299_v40, %v2798_v31  ;;  %vm1235_vm9 = vcmp.eq.s32.totalorder %v2862_v49, %v2809_v43 }
 0x22d   : > { %vm3836_vm10 = vmand %vm465_vm3, %vm549_vm13  ;;  %v1522_v2 = vadd.s32 %v3711_v9, %v1510_v46  ;;  %v3859_v9 = vadd.s32 %v3373_v13, %v1412_v29  ;;  %vm4640_vm3 = vnez %v4506_v26  ;;  %vm1379_vm4 = vcmp.eq.s32.totalorder %v1299_v40, %v2809_v43 }
 0x22e   : > { %vm3847_vm15 = vmor %vm4635_vm8, %vm1313_vm12  ;;  %v1406_v31 = vadd.s32 72, %v2520_v12  ;;  %v1410_v49 = vadd.s32 104, %v2520_v12 }
 0x22f   : > { %v4637_v11 = vsel %vm3847_vm15, 4294967295, %v4636_v11  ;;  %vm3851_vm5 = vmor %vm1330_vm6, %vm1346_vm1  ;;  %vm1378_vm15 = vcmp.eq.s32.totalorder %v1296_v37, %v2809_v43 }
 0x230   : > { %vm1219_vm13 = vmor %vm4640_vm3, %vm1203_vm14  ;;  %vm1481_vm14 = vcmp.lt.s32.totalorder %v3859_v9, %v3393_v47  ;;  %v3889_v8 = vadd.s32 %v3373_v13, %v1406_v31  ;;  %v3895_v14 = vadd.s32 %v3373_v13, %v1410_v49 }
 0x231   : > { %vm765_vm1 = vmand %vm3836_vm10, %vm4641_vm7  ;;  %vm4651_vm7 = vnez %v4510_v57 }
 0x232   : > { %vm1251_vm6 = vmor %vm1219_vm13, %vm1235_vm9  ;;  %vm933_vm13 = vcmp.le.f32.partialorder %v2836_v0, %v910_v51 }
 0x233   : > { %vm1331_vm12 = vmor %vm1251_vm6, %vm1315_vm0  ;;  %vm4644_vm0 = vmmov 1  }
 0x234   : > { %vm1363_vm8 = vmor %vm1331_vm12, %vm1347_vm2  ;;  %vm4645_vm2 = vnez %v4542_v52 }
 0x235   : > { %vm1395_vm3 = vmor %vm1363_vm8, %vm1379_vm4  ;;  %vm4649_vm4 = vcmp.le.f32.partialorder %v4648_v54, %v2705_v4 }
 0x236   : > { %vm3876_vm11 = vmor %vm3851_vm5, %vm1378_vm15  ;;  %vm1345_vm5 = vcmp.eq.s32.totalorder %v3110_v61, %v2802_v33  ;;  %v914_v33 = vpop.permute.xlu1 %913 }
 0x237   : > { %vm1449_vm9 = vmxor %vm1395_vm3, %vm4644_vm0  ;;  %vm4650_vm3 = vnez %v4637_v11 }
 0x238   : > { %vm1465_vm6 = vmand %vm4645_vm2, %vm1449_vm9 }
 0x239   : > { %vm3884_vm12 = vmand %vm1465_vm6, %vm1481_vm14  ;;  %vm1377_vm14 = vcmp.eq.s32.totalorder %v3110_v61, %v2809_v43  ;;  %vm1479_vm6 = vcmp.lt.s32.totalorder %v3895_v14, %v3393_v47 }
 0x23a   : > { %v1513_v10 = vsel %vm3884_vm12, 1, %v4554_v41  ;;  %vm949_vm15 = vmand %vm4649_vm4, %vm933_vm13  ;;  %vm1475_vm13 = vcmp.lt.s32.totalorder %v3889_v8, %v3393_v47 }
 0x23b   : > { %v1525_v52 = vadd.s32 %v1521_v55, %v1513_v10  ;;  %vm965_vm8 = vmand %vm765_vm1, %vm949_vm15  ;;  %vm4652_vm1 = vnez %v4518_v50  ;;  %v4660_v55 = vld [vmem:[#allocation36_spill] sm:$0xff] }
 0x23c   : > { %vm1361_vm9 = vmor %vm4650_vm3, %vm1345_vm5 }
 0x23d   : > { %vm1393_vm2 = vmor %vm1361_vm9, %vm1377_vm14  ;;  %vm934_vm14 = vcmp.le.f32.partialorder %v2836_v0, %v914_v33 }
 0x23e   : > { %vm1447_vm4 = vmxor %vm1393_vm2, %vm4644_vm0 }
 0x23f   : > { %vm1463_vm10 = vmand %vm965_vm8, %vm1447_vm4  ;;  %vm850_vm8 = vcmp.le.f32.partialorder %v2961_v48, %v2705_v4  ;;  %vm4661_vm4 = vnez %v4660_v55 }
 0x240   : > { %vm4653_vm15 = vmand %vm4651_vm7, %vm4652_vm1 }
 0x241   : > { %vm3925_vm5 = vmand %vm4653_vm15, %vm1475_vm13  ;;  %vm1480_vm13 = vcmp.lt.s32.totalorder %v3918_v22, %v3393_v47 }
 0x242   : > { %vm3930_vm3 = vmand %vm1463_vm10, %vm1479_vm6  ;;  %v1507_v13 = vsel %vm3925_vm5, 1, %v4554_v41  ;;  %vm4659_vm6 = vnez %v4658_v28 }
 0x243   : > { %v1511_v57 = vsel %vm3930_vm3, 1, %v4554_v41  ;;  %v1519_v50 = vadd.s32 %v3607_v17, %v1507_v13  ;;  %vm1448_vm9 = vmxor %vm3876_vm11, %vm4644_vm0 }
 0x244   : > { %vm950_vm2 = vmand %vm850_vm8, %vm934_vm14 }
 0x245   : > { %v1523_v0 = vadd.s32 %v1519_v50, %v1511_v57  ;;  %vm4662_vm10 = vmand %vm4659_vm6, %vm4661_vm4 }
 0x246   : > { %vm966_vm7 = vmand %vm4662_vm10, %vm950_vm2 }
 0x247   : > { %vm1464_vm1 = vmand %vm966_vm7, %vm1448_vm9  ;;  %v1526_v48 = vadd.s32 %v1523_v0, %v1522_v2  ;;  %v2157_v2 = vmov 4294967295  }
 0x248   : > { %vm3953_vm15 = vmand %vm1464_vm1, %vm1480_vm13  ;;  %329 = vst [vmem:[%s3964_s1] sm:$0x3] %v2157_v2 }
 0x249   : > { %v1512_v17 = vsel %vm3953_vm15, 1, %v4554_v41 }
 0x24a   : > { %v1524_v37 = vadd.s32 %v3752_v42, %v1512_v17 }
 0x24c   : > { %v1527_v24 = vadd.s32 %v1525_v52, %v1524_v37 }
 0x24e   : > { %v1528_v19 = vadd.s32 %v1527_v24, %v1526_v48 }
 0x250   : > { %v1530_v29 = vshrl.u32 %v1528_v19, 16  ;;  %v1529_v40 = vand.u32 65535, %v1528_v19 }
 0x252   : > { %v1532_v46 = vcvt.s32.f32 %v1530_v29  ;;  %v1531_v38 = vcvt.s32.f32 %v1529_v40 }
 0x254   : > { %1535 = vadd.xlane.f32.xlu1 %v1532_v46  ;;  %1533 = vadd.xlane.f32.xlu0 %v1531_v38 }
 0x2e1   : > { %v1536_v41 = vpop.xlane.xlu1 %1535  ;;  %v1534_v42 = vpop.xlane.xlu0 %1533 }
 0x2e2   : > { %v1538_v11 = vcvt.f32.s32 %v1536_v41  ;;  %v1537_v51 = vcvt.f32.s32 %v1534_v42 }
 0x2e4   : > { %v1539_v20 = vshll.u32 %v1538_v11, 16 }
 0x2e6   : > { %v1540_v31 = vadd.s32 %v1539_v20, %v1537_v51 }
 0x2e8   : > { %v1541_v49 = vrot.slane %v1540_v31, 4 }
 0x2ea   : > { %v1542_v26 = vadd.s32 %v1541_v49, %v1540_v31 }
 0x2ec   : > { %v1543_v10 = vrot.slane %v1542_v26, 2 }
 0x2ee   : > { %v1544_v54 = vadd.s32 %v1543_v10, %v1542_v26 }
 0x2f0   : > { %v1545_v52 = vrot.slane %v1544_v54, 1 }
 0x2f2   : > { %v1546_v21 = vadd.s32 %v1545_v52, %v1544_v54 }
 0x2f4   : > { %1945 = vpush %v1546_v21 }
 0x325   : > { %s3967_s10 = spop %1945  }
 0x326   : > { %p1548_p0 = scmp.gt.s32.totalorder %s3967_s10, 0 }
 0x327   : > { %v1555_v33 = vmul.u32 (%p1548_p0), 128, %v3456_v18  ;;  %v1556_v13 = vmul.u32 (%p1548_p0), 128, %v3514_v45  ;;  %vm4665_vm11 = vnez (%p1548_p0), %v4553_v34  ;;  %vm4666_vm0 = vnez (%p1548_p0), %v4569_v59  ;;  %s4037_s13 = smov (%p1548_p0), 0  }
 0x328   : > { %1554 = sbr.rel (!%p1548_p0) target bundleno = 1228 (0x4cc), region = 44  ;;  %v1557_v57 = vmul.u32 (%p1548_p0), 128, %v3487_v1  ;;  %v1558_v50 = vmul.u32 (%p1548_p0), 128, %v3536_v62  ;;  %vm4667_vm14 = vnez (%p1548_p0), %v4559_v56  ;;  %vm4668_vm8 = vnez (%p1548_p0), %v4572_v58 }
 0x329   : > { %v1571_v0 = vadd.s32 (%p1548_p0), %v1555_v33, %v3393_v47  ;;  %v1572_v28 = vadd.s32 (%p1548_p0), %v1556_v13, %v3393_v47  ;;  %v1559_v55 = vmul.u32 (%p1548_p0), 128, %v3378_v7  ;;  %v1560_v48 = vmul.u32 (%p1548_p0), 128, %v3553_v35 }
 0x32a   : > { %v1573_v17 = vadd.s32 (%p1548_p0), %v1557_v57, %v3393_v47  ;;  %v1574_v37 = vadd.s32 (%p1548_p0), %v1558_v50, %v3393_v47  ;;  %v1561_v18 = vmul.u32 (%p1548_p0), 128, %v3417_v63  ;;  %v1562_v45 = vmul.u32 (%p1548_p0), 128, %v3590_v6 }
 0x32b   : > { %v1587_v1 = vsel (%p1548_p0), %vm4665_vm11, %v1571_v0, 2147483647  ;;  %v1588_v62 = vsel (%p1548_p0), %vm4666_vm0, %v1572_v28, 2147483647  ;;  %v1575_v24 = vadd.s32 (%p1548_p0), %v1559_v55, %v3393_v47  ;;  %v1576_v7 = vadd.s32 (%p1548_p0), %v1560_v48, %v3393_v47 }
 0x32c   : > { %1603 = vst [vmem:[#allocation3] sm:$0xff] (%p1548_p0), %v1587_v1  ;;  %1604 = vst [vmem:[#allocation3 + $0x8] sm:$0xff] (%p1548_p0), %v1588_v62  ;;  %v1589_v35 = vsel (%p1548_p0), %vm4667_vm14, %v1573_v17, 2147483647  ;;  %v1590_v63 = vsel (%p1548_p0), %vm4668_vm8, %v1574_v37, 2147483647  ;;  %v1577_v6 = vadd.s32 (%p1548_p0), %v1561_v18, %v3393_v47  ;;  %v1578_v34 = vadd.s32 (%p1548_p0), %v1562_v45, %v3393_v47 }
 0x32d   : > { %1605 = vst [vmem:[#allocation3 + $0x10] sm:$0xff] (%p1548_p0), %v1589_v35  ;;  %1606 = vst [vmem:[#allocation3 + $0x18] sm:$0xff] (%p1548_p0), %v1590_v63  ;;  %vm4669_vm9 = vnez (%p1548_p0), %v4531_v39  ;;  %vm4670_vm13 = vnez (%p1548_p0), %v4577_v27  ;;  %v1563_v29 = vmul.u32 (%p1548_p0), 128, %v3668_v36  ;;  %v1564_v56 = vmul.u32 (%p1548_p0), 128, %v3889_v8 }
 0x32e   : > { %v1591_v59 = vsel (%p1548_p0), %vm4669_vm9, %v1575_v24, 2147483647  ;;  %v1592_v19 = vsel (%p1548_p0), %vm4670_vm13, %v1576_v7, 2147483647  ;;  %vm4671_vm2 = vnez (%p1548_p0), %v4550_v25  ;;  %vm4672_vm6 = vnez (%p1548_p0), %v4582_v32 }
 0x32f   : > { %1607 = vst [vmem:[#allocation3 + $0x20] sm:$0xff] %v1591_v59  ;;  %1608 = vst [vmem:[#allocation3 + $0x28] sm:$0xff] %v1592_v19  ;;  %v1593_v58 = vsel %vm4671_vm2, %v1577_v6, 2147483647  ;;  %v1594_v40 = vsel %vm4672_vm6, %v1578_v34, 2147483647  ;;  %v1579_v27 = vadd.s32 %v1563_v29, %v3393_v47  ;;  %v1580_v36 = vadd.s32 %v1564_v56, %v3393_v47 }
 0x330   : > { %v1565_v46 = vmul.u32 128, %v3694_v16  ;;  %v1566_v39 = vmul.u32 128, %v3755_v30  ;;  %1609 = vst [vmem:[#allocation3 + $0x30] sm:$0xff] %v1593_v58  ;;  %1610 = vst [vmem:[#allocation3 + $0x38] sm:$0xff] %v1594_v40  ;;  %vm4673_vm4 = vnez %v4601_v23  ;;  %vm4674_vm10 = vnez %v4610_v60 }
 0x331   : > { %v1567_v8 = vmul.u32 128, %v3808_v15  ;;  %v1568_v38 = vmul.u32 128, %v3895_v14  ;;  %v1595_v30 = vsel %vm4673_vm4, %v1579_v27, 2147483647  ;;  %v1596_v41 = vsel %vm3925_vm5, %v1580_v36, 2147483647 }
 0x332   : > { %v1581_v25 = vadd.s32 %v1565_v46, %v3393_v47  ;;  %v1582_v2 = vadd.s32 %v1566_v39, %v3393_v47  ;;  %v1569_v32 = vmul.u32 128, %v3918_v22  ;;  %v1570_v16 = vmul.u32 128, %v3859_v9  ;;  %1611 = vst [vmem:[#allocation3 + $0x40] sm:$0xff] %v1595_v30  ;;  %1612 = vst [vmem:[#allocation3 + $0x48] sm:$0xff] %v1596_v41 }
 0x333   : > { %v1583_v42 = vadd.s32 %v1567_v8, %v3393_v47  ;;  %v1584_v15 = vadd.s32 %v1568_v38, %v3393_v47  ;;  %vm4675_vm7 = vnez %v4624_v5  ;;  %vm4676_vm5 = vnez %v4632_v53 }
 0x334   : > { %v1597_v14 = vsel %vm4674_vm10, %v1581_v25, 2147483647  ;;  %v1598_v22 = vsel %vm4675_vm7, %v1582_v2, 2147483647  ;;  %v1585_v9 = vadd.s32 %v1569_v32, %v3393_v47  ;;  %v1586_v23 = vadd.s32 %v1570_v16, %v3393_v47 }
 0x335   : > { %1613 = vst [vmem:[#allocation3 + $0x50] sm:$0xff] %v1597_v14  ;;  %1614 = vst [vmem:[#allocation3 + $0x58] sm:$0xff] %v1598_v22  ;;  %v1599_v43 = vsel %vm4676_vm5, %v1583_v42, 2147483647  ;;  %v1600_v11 = vsel %vm3930_vm3, %v1584_v15, 2147483647 }
 0x336   : > { %1615 = vst [vmem:[#allocation3 + $0x60] sm:$0xff] %v1599_v43  ;;  %1616 = vst [vmem:[#allocation3 + $0x68] sm:$0xff] %v1600_v11  ;;  %v1601_v60 = vsel %vm3953_vm15, %v1585_v9, 2147483647  ;;  %v1602_v5 = vsel %vm3884_vm12, %v1586_v23, 2147483647 }
 0x337   : > { %1617 = vst [vmem:[#allocation3 + $0x70] sm:$0xff] %v1601_v60  ;;  %1618 = vst [vmem:[#allocation3 + $0x78] sm:$0xff] %v1602_v5 }
 0x338 LB: >> { %s1627_s14 = sld [smem:[#allocation2]]  ;;  %p1626_p1 = scmp.gt.s32.totalorder %s2144_s10, 0  ;;  %s2148_s13 = sphi %s4037_s13, %s1624_s13   ;;  %s2144_s10 = sphi %s3967_s10, %s1784_s10  }
 0x33e   : >> { %p1628_p2 = scmp.lt.s32.totalorder %s1627_s14, 128 }
 0x340   : >> { %p4046_p3 = pnand %p1628_p2, %p1626_p1 }
 0x341   : >> { %v4052_v47 = vld [vmem:[#allocation3] sm:$0xff] (!%p4046_p3)  ;;  %v4054_v53 = vld [vmem:[#allocation3 + $0x8] sm:$0xff] (!%p4046_p3)  ;;  %v4056_v3 = vld [vmem:[#allocation3 + $0x10] sm:$0xff] (!%p4046_p3)  ;;  %s1705_s16 = sld [smem:[#allocation2]] (!%p4046_p3) }
 0x342   : >> { %1632 = sbr.rel (%p4046_p3) target bundleno = 1217 (0x4c1), region = 55  ;;  %v4058_v61 = vld [vmem:[#allocation3 + $0x18] sm:$0xff] (!%p4046_p3)  ;;  %v4060_v4 = vld [vmem:[#allocation3 + $0x20] sm:$0xff] (!%p4046_p3)  ;;  %v4062_v20 = vld [vmem:[#allocation3 + $0x28] sm:$0xff] (!%p4046_p3) }
 0x343   : >> { %v4064_v51 = vld [vmem:[#allocation3 + $0x30] sm:$0xff] (!%p4046_p3)  ;;  %v4066_v31 = vld [vmem:[#allocation3 + $0x38] sm:$0xff] (!%p4046_p3)  ;;  %v4068_v49 = vld [vmem:[#allocation3 + $0x40] sm:$0xff] (!%p4046_p3)  ;;  %vm1649_vm12 = vcmp.lt.s32.totalorder (!%p4046_p3), %v4052_v47, %v4060_v4  ;;  %vm1651_vm3 = vcmp.lt.s32.totalorder (!%p4046_p3), %v4054_v53, %v4062_v20 }
 0x344   : >> { %v4074_v26 = vld [vmem:[#allocation3 + $0x48] sm:$0xff] (!%p4046_p3)  ;;  %v4076_v10 = vld [vmem:[#allocation3 + $0x50] sm:$0xff] (!%p4046_p3)  ;;  %v4078_v54 = vld [vmem:[#allocation3 + $0x58] sm:$0xff] (!%p4046_p3)  ;;  %v1650_v52 = vsel (!%p4046_p3), %vm1649_vm12, %v4052_v47, %v4060_v4  ;;  %v1652_v21 = vsel (!%p4046_p3), %vm1651_vm3, %v4054_v53, %v4062_v20  ;;  %vm1653_vm1 = vcmp.lt.s32.totalorder (!%p4046_p3), %v4056_v3, %v4064_v51  ;;  %vm1655_vm15 = vcmp.lt.s32.totalorder (!%p4046_p3), %v4058_v61, %v4066_v31 }
 0x345   : >> { %v4088_v33 = vld [vmem:[#allocation3 + $0x60] sm:$0xff] (!%p4046_p3)  ;;  %v4090_v13 = vld [vmem:[#allocation3 + $0x68] sm:$0xff] (!%p4046_p3)  ;;  %v4092_v57 = vld [vmem:[#allocation3 + $0x70] sm:$0xff] (!%p4046_p3)  ;;  %v1654_v50 = vsel (!%p4046_p3), %vm1653_vm1, %v4056_v3, %v4064_v51  ;;  %v1656_v0 = vsel (!%p4046_p3), %vm1655_vm15, %v4058_v61, %v4066_v31  ;;  %vm1657_vm11 = vcmp.lt.s32.totalorder (!%p4046_p3), %v1650_v52, %v4068_v49  ;;  %vm1659_vm0 = vcmp.lt.s32.totalorder (!%p4046_p3), %v1652_v21, %v4074_v26 }
 0x346   : >> { %v4100_v28 = vld [vmem:[#allocation3 + $0x78] sm:$0xff] (!%p4046_p3)  ;;  %v1658_v55 = vsel (!%p4046_p3), %vm1657_vm11, %v1650_v52, %v4068_v49  ;;  %v1660_v48 = vsel (!%p4046_p3), %vm1659_vm0, %v1652_v21, %v4074_v26  ;;  %vm1661_vm14 = vcmp.lt.s32.totalorder (!%p4046_p3), %v1654_v50, %v4076_v10  ;;  %vm1663_vm8 = vcmp.lt.s32.totalorder (!%p4046_p3), %v1656_v0, %v4078_v54  ;;  %v1712_v16 = vld [vmem:[%s3964_s1] sm:$0x3] (!%p4046_p3) }
 0x347   : >> { %v1662_v17 = vsel (!%p4046_p3), %vm1661_vm14, %v1654_v50, %v4076_v10  ;;  %v1664_v37 = vsel (!%p4046_p3), %vm1663_vm8, %v1656_v0, %v4078_v54  ;;  %vm1665_vm9 = vcmp.lt.s32.totalorder (!%p4046_p3), %v1658_v55, %v4088_v33  ;;  %vm1667_vm13 = vcmp.lt.s32.totalorder (!%p4046_p3), %v1660_v48, %v4090_v13  ;;  %s1715_s17 = sadd.s32 (!%p4046_p3), 1, %s1705_s16 }
 0x348   : >> { %v1666_v18 = vsel (!%p4046_p3), %vm1665_vm9, %v1658_v55, %v4088_v33  ;;  %v1668_v45 = vsel (!%p4046_p3), %vm1667_vm13, %v1660_v48, %v4090_v13  ;;  %vm1669_vm2 = vcmp.lt.s32.totalorder (!%p4046_p3), %v1662_v17, %v4092_v57  ;;  %vm1671_vm6 = vcmp.lt.s32.totalorder (!%p4046_p3), %v1664_v37, %v4100_v28  ;;  %1717 = sst [smem:[#allocation2]] (!%p4046_p3), %s1715_s17 }
 0x349   : >> { %v1670_v1 = vsel %vm1669_vm2, %v1662_v17, %v4092_v57  ;;  %v1672_v62 = vsel %vm1671_vm6, %v1664_v37, %v4100_v28  ;;  %vm1673_vm4 = vcmp.lt.s32.totalorder %v1666_v18, %v1668_v45  ;;  %v1710_v32 = vstv %s1705_s16 }
 0x34a   : >> { %v1674_v24 = vsel %vm1673_vm4, %v1666_v18, %v1668_v45  ;;  %vm1675_vm10 = vcmp.lt.s32.totalorder %v1670_v1, %v1672_v62  ;;  %vm1706_vm15 = vcmp.eq.s32.totalorder %v2520_v12, 0  ;;  %vm1711_vm11 = vcmp.eq.s32.totalorder %v3369_v44, %v1710_v32 }
 0x34b   : >> { %v1676_v7 = vsel %vm1675_vm10, %v1670_v1, %v1672_v62 }
 0x34c   : >> { %vm1677_vm7 = vcmp.lt.s32.totalorder %v1674_v24, %v1676_v7 }
 0x34d   : >> { %v1678_v35 = vsel %vm1677_vm7, %v1674_v24, %v1676_v7 }
 0x34e   : >> { %v1680_v63 = vshra.s32 %v1678_v35, 16  ;;  %v1679_v34 = vand.u32 65535, %v1678_v35 }
 0x350   : >> { %v1682_v6 = vcvt.s32.f32 %v1680_v63  ;;  %v1681_v59 = vcvt.s32.f32 %v1679_v34 }
 0x352   : >> { %1683 = vmin.xlane.f32.xlu0 %v1682_v6 }
 0x3df   : >> { %v1684_v19 = vpop.xlane.xlu0 %1683 }
 0x3e0   : >> { %vm1685_vm5 = vcmp.eq.f32.partialorder %v1682_v6, %v1684_v19  ;;  %v1690_v56 = vcvt.f32.s32 %v1684_v19 }
 0x3e1   : >> { %v1686_v29 = vsel %vm1685_vm5, %v1681_v59, inf }
 0x3e2   : >> { %1687 = vmin.xlane.f32.xlu0 %v1686_v29  ;;  %v1691_v40 = vshll.u32 %v1690_v56, 16 }
 0x46f   : >> { %v1688_v58 = vpop.xlane.xlu0 %1687 }
 0x470   : >> { %v1689_v46 = vcvt.f32.s32 %v1688_v58 }
 0x472   : >> { %v1692_v39 = vadd.s32 %v1691_v40, %v1689_v46 }
 0x474   : >> { %v1693_v27 = vrot.slane %v1692_v39, 4 }
 0x476   : >> { %vm1694_vm12 = vcmp.lt.s32.totalorder %v1692_v39, %v1693_v27 }
 0x477   : >> { %v1695_v36 = vsel %vm1694_vm12, %v1692_v39, %v1693_v27 }
 0x478   : >> { %v1696_v8 = vrot.slane %v1695_v36, 2 }
 0x47a   : >> { %vm1697_vm3 = vcmp.lt.s32.totalorder %v1695_v36, %v1696_v8 }
 0x47b   : >> { %v1698_v38 = vsel %vm1697_vm3, %v1695_v36, %v1696_v8 }
 0x47c   : >> { %v1699_v25 = vrot.slane %v1698_v38, 1 }
 0x47e   : >> { %vm1700_vm1 = vcmp.lt.s32.totalorder %v1698_v38, %v1699_v25 }
 0x47f   : >> { %v1701_v2 = vsel %vm1700_vm1, %v1698_v38, %v1699_v25 }
 0x480   : >> { %1947 = vpush %v1701_v2 }
 0x4b1   : >> { %s1948_s18 = spop %1947 }
 0x4b2   : >> { %s1703_s19 = sshrl.u32 %s1948_s18, 7  ;;  %s1704_s20 = sand.u32 127, %s1948_s18  ;;  %v1734_v30 = vstv %s1948_s18 }
 0x4b3   : >> { %v1707_v41 = vstv %s1703_s19  ;;  %v1708_v42 = vstv %s1704_s20  ;;  %vm1735_vm0 = vcmp.eq.s32.totalorder %v4052_v47, %v1734_v30  ;;  %vm1736_vm14 = vcmp.eq.s32.totalorder %v4054_v53, %v1734_v30 }
 0x4b4   : >> { %v1709_v15 = vsel %vm1706_vm15, %v1707_v41, %v1708_v42  ;;  %vm1737_vm8 = vcmp.eq.s32.totalorder %v4056_v3, %v1734_v30  ;;  %vm1738_vm9 = vcmp.eq.s32.totalorder %v4058_v61, %v1734_v30  ;;  %vm1739_vm13 = vcmp.eq.s32.totalorder %v4060_v4, %v1734_v30 }
 0x4b5   : >> { %v1713_v14 = vsel %vm1711_vm11, %v1709_v15, %v1712_v16  ;;  %vm1740_vm2 = vcmp.eq.s32.totalorder %v4062_v20, %v1734_v30  ;;  %vm1741_vm6 = vcmp.eq.s32.totalorder %v4064_v51, %v1734_v30  ;;  %vm1742_vm4 = vcmp.eq.s32.totalorder %v4066_v31, %v1734_v30 }
 0x4b6   : >> { %1714 = vst [vmem:[%s3964_s1] sm:$0x3] %v1713_v14  ;;  %vm1743_vm10 = vcmp.eq.s32.totalorder %v4068_v49, %v1734_v30  ;;  %vm1744_vm7 = vcmp.eq.s32.totalorder %v4074_v26, %v1734_v30  ;;  %vm1745_vm5 = vcmp.eq.s32.totalorder %v4076_v10, %v1734_v30  ;;  %vm1746_vm12 = vcmp.eq.s32.totalorder %v4078_v54, %v1734_v30 }
 0x4b7   : >> { %vm1747_vm3 = vcmp.eq.s32.totalorder %v4088_v33, %v1734_v30  ;;  %vm1748_vm1 = vcmp.eq.s32.totalorder %v4090_v13, %v1734_v30  ;;  %v1751_v22 = vsel %vm1735_vm0, 2147483647, %v4052_v47  ;;  %v1752_v9 = vsel %vm1736_vm14, 2147483647, %v4054_v53 }
 0x4b8   : >> { %v1753_v23 = vsel %vm1737_vm8, 2147483647, %v4056_v3  ;;  %vm1749_vm15 = vcmp.eq.s32.totalorder %v4092_v57, %v1734_v30  ;;  %v1754_v43 = vsel %vm1738_vm9, 2147483647, %v4058_v61  ;;  %v1755_v11 = vsel %vm1739_vm13, 2147483647, %v4060_v4 }
 0x4b9   : >> { %v1756_v60 = vsel %vm1740_vm2, 2147483647, %v4062_v20  ;;  %1767 = vst [vmem:[#allocation3] sm:$0xff] %v1751_v22  ;;  %1768 = vst [vmem:[#allocation3 + $0x8] sm:$0xff] %v1752_v9  ;;  %vm1750_vm11 = vcmp.eq.s32.totalorder %v4100_v28, %v1734_v30  ;;  %v1757_v5 = vsel %vm1741_vm6, 2147483647, %v4064_v51 }
 0x4ba   : >> { %1769 = vst [vmem:[#allocation3 + $0x10] sm:$0xff] %v1753_v23  ;;  %v1758_v47 = vsel %vm1742_vm4, 2147483647, %v4066_v31  ;;  %v1759_v53 = vsel %vm1743_vm10, 2147483647, %v4068_v49  ;;  %1770 = vst [vmem:[#allocation3 + $0x18] sm:$0xff] %v1754_v43 }
 0x4bb   : >> { %1771 = vst [vmem:[#allocation3 + $0x20] sm:$0xff] %v1755_v11  ;;  %1772 = vst [vmem:[#allocation3 + $0x28] sm:$0xff] %v1756_v60  ;;  %v1760_v3 = vsel %vm1744_vm7, 2147483647, %v4074_v26  ;;  %v1761_v61 = vsel %vm1745_vm5, 2147483647, %v4076_v10 }
 0x4bc   : >> { %v1762_v4 = vsel %vm1746_vm12, 2147483647, %v4078_v54  ;;  %1773 = vst [vmem:[#allocation3 + $0x30] sm:$0xff] %v1757_v5  ;;  %1774 = vst [vmem:[#allocation3 + $0x38] sm:$0xff] %v1758_v47  ;;  %v1763_v20 = vsel %vm1747_vm3, 2147483647, %v4088_v33 }
 0x4bd   : >> { %1775 = vst [vmem:[#allocation3 + $0x40] sm:$0xff] %v1759_v53  ;;  %v1764_v51 = vsel %vm1748_vm1, 2147483647, %v4090_v13  ;;  %v1765_v31 = vsel %vm1749_vm15, 2147483647, %v4092_v57  ;;  %1776 = vst [vmem:[#allocation3 + $0x48] sm:$0xff] %v1760_v3 }
 0x4be   : >> { %1777 = vst [vmem:[#allocation3 + $0x50] sm:$0xff] %v1761_v61  ;;  %1778 = vst [vmem:[#allocation3 + $0x58] sm:$0xff] %v1762_v4  ;;  %v1766_v49 = vsel %vm1750_vm11, 2147483647, %v4100_v28 }
 0x4bf   : >> { %1779 = vst [vmem:[#allocation3 + $0x60] sm:$0xff] %v1763_v20  ;;  %1780 = vst [vmem:[#allocation3 + $0x68] sm:$0xff] %v1764_v51 }
 0x4c0   : >> { %1781 = vst [vmem:[#allocation3 + $0x70] sm:$0xff] %v1765_v31  ;;  %1782 = vst [vmem:[#allocation3 + $0x78] sm:$0xff] %v1766_v49 }
 0x4c1 PF: >> { %s1940_s21 = scalar_select %p4046_p3, 0, 1 }
 0x4c2   : >> { %s1624_s13 = sadd.s32 1, %s2148_s13  }
 0x4c3   : >> { %s1784_s10 = ssub.s32 %s2144_s10, %s1940_s21   ;;  %p1621_p5 = scmp.ge.s32.totalorder %s1624_s13, 128  }
 0x4c5   : > { %1623 = sbr.rel (!%p1621_p5) target bundleno = 824 (0x338), region = 101 }
 0x4cc PF: > { %s1942_s22 = sshll.u32 %s2132_s28, 5  ;;  %s1799_s14 = sshll.u32 %s3964_s1, 4  ;;  %s1800_s14 = int_to_ptr.vmem [resolvable:$true] %s1799_s14 }
 0x4cd   : > { %s4192_s8 = scalar_lea.hbm %s4242_s6, %s1942_s22  ;;  %s1786_s15 = scalar_lea.sflag [#allocation8], %s285_s24 }
 0x4ce   : > { %s2053_s16 = scalar_lea.vmem %s1800_s14, 32  ;;  %s2159_s10 = smov [#allocation7]  }
 0x4cf   : > { %p2054_p6 = scmp.ne.s32.totalorder %s1800_s14, %s2053_s16  ;;  %s2057_s13 = sshll.u32 %s2159_s10, 4  ;;  %s2058_s13 = int_to_ptr.vmem [resolvable:$false] %s2057_s13 }
 0x4d0   : > { %s2059_s17 = scalar_lea.vmem %s2058_s13, 64  ;;  %p2060_p10 = scmp.lt.s32.totalorder %s1800_s14, %s2058_s13 }
 0x4d1   : > { %p2055_p7 = pnand %p2054_p6, %p2241_p4  ;;  %p2061_p11 = scmp.lt.s32.totalorder %s2059_s17, %s2053_s16 }
 0x4d3   : > { %p2056_p9 = pneg %p2055_p7  ;;  %p2062_p12 = por %p2061_p11, %p2060_p10 }
 0x4d5   : > { %p2063_p13 = pnand %p2062_p12, %p2056_p9 }
 0x4d7   : > { %2066 = shalt.err (!%p2063_p13)
}
 0x4d8   : > { %s2067_s28 = scalar_lea.hbm %s4192_s8, 32  ;;  %s2071_s18 = scalar_lea.hbm %s4242_s6, 64 }
 0x4d9   : > { %p2068_p0 = scmp.ne.s32.totalorder %s4192_s8, %s2067_s28  ;;  %p2072_p3 = scmp.lt.u32.totalorder %s4192_s8, %s4242_s6 }
 0x4da   : > { %p2073_p5 = scmp.lt.u32.totalorder %s2071_s18, %s2067_s28  ;;  %p2075_p7 = scmp.lt.u32.totalorder %s2067_s28, %s4192_s8 }
 0x4db   : > { %p2069_p1 = pnand %p2068_p0, %p2241_p4 }
 0x4dc   : > { %p2074_p6 = por %p2073_p5, %p2072_p3 }
 0x4dd   : > { %p2070_p2 = pneg %p2069_p1 }
 0x4de   : > { %p2076_p9 = por %p2075_p7, %p2074_p6 }
 0x4e0   : > { %p2077_p10 = pnand %p2076_p9, %p2070_p2 }
 0x4e2   : > { %2080 = shalt.err (!%p2077_p10)
}
 0x4e3   : > { %1949 = dma.vmem_to_hbm [thread:$0]  (%p2241_p4), %s1800_s14, 32, %s4192_s8, %s1786_s15  }
 0x4e4 PF: > { %p1955_p11 = scmp.ge.s32.totalorder %s2140_s30, 2  ;;  %s1811_s21 = sand.u32 1, %s2120_s25  }
 0x4e5   : > { %s1812_s22 = scalar_lea.sflag [#allocation8], %s1811_s21 }
 0x4e6   : > { %p1952_p12 = pnand %p1955_p11, %p2248_p8 }
 0x4e8   : > { %2114 = dma.done.wait (!%p1952_p12), %s1812_s22, 32  }
 0x4e9   : > { %2116 = vsyncadd (!%p1952_p12), %s1812_s22, 4294967264  ;;  %s21_s30 = sadd.s32 1, %s2140_s30   ;;  %s4678_s25 = smov %s2124_s26 }
 0x4ea   : > { %p18_p13 = scmp.ge.s32.totalorder %s21_s30, 4   ;;  %s4679_s26 = smov %s2128_s27 }
 0x4eb   : > { %s4680_s27 = smov %s2254_s12  ;;  %s4681_s28 = smov %s2136_s29 }
 0x4ec   : > { %s4682_s29 = smov %s4684_s7  ;;  %20 = sbr.rel (!%p18_p13) target bundleno = 7 (0x7), region = 112 }
 0x4f3   :  { %1817 = vsyncpa [#allocation8], 1 }
 0x4f4   :  { %1819 = vsyncpa [#allocation8 + $0x1], 1 }

</bundles_post_ra>
